<compile_context>
chip_gen: v7x
topology: tpu7x:2x2x1
jax: 0.10.0
libtpu: 0.0.40
codegen_flags: <defaults>
</compile_context>

<pallas_src>
import math
import functools

import jax
import jax.numpy as jnp
from jax.experimental import pallas as pl
from jax.experimental.pallas import tpu as pltpu


def _round_up(x, m):
    return ((x + m - 1) // m) * m


# ----------------------------------------------------------------------------
# Fused kernel: entire VaDE forward on one batch tile, everything in VMEM.
#   refs = [ x,
#            enc_w * n_enc, head_w, dec_w * n_dec, fin_w,   # bf16, resident
#            bias_cat,                                      # f32, resident
#            muvar_out, recon_out ]
#   bias_slices: static (offset, width) into bias_cat per layer, in layer order.
# ----------------------------------------------------------------------------
def _vade_fused_kernel(*refs, n_enc, n_dec, bias_slices):
    n_w = n_enc + 1 + n_dec + 1
    x_ref = refs[0]
    w_refs = refs[1:1 + n_w]
    bias_ref = refs[1 + n_w]
    muvar_ref = refs[2 + n_w]
    recon_ref = refs[3 + n_w]

    def bias(layer_idx):
        off, width = bias_slices[layer_idx]
        return bias_ref[:, off:off + width]          # (1, width) f32, static slice

    def linear(a_f32, layer_idx):
        # bf16 operands -> MXU native rate; f32 accumulation; f32 bias add.
        return jnp.dot(a_f32.astype(jnp.bfloat16), w_refs[layer_idx][...],
                       preferred_element_type=jnp.float32) + bias(layer_idx)

    li = 0
    # ---- encoder: chain of Linear + ReLU, activations stay in vregs/VMEM ----
    h = x_ref[...]
    for _ in range(n_enc):
        h = jnp.maximum(linear(h, li), 0.0)
        li += 1

    # ---- fused mu/logvar head (lane-dense 128-wide output slab) ----
    mv = linear(h, li)
    muvar_ref[...] = mv
    li += 1

    # ---- decoder: z = mu (eval-mode reparameterize).  dec_w[0] is zero-padded
    # on its input rows, so feeding the full slab is exactly mu @ W_dec0. ----
    d = mv
    for _ in range(n_dec):
        d = jnp.maximum(linear(d, li), 0.0)
        li += 1

    y = linear(d, li)
    # sigmoid: exp -> EUP; exact reciprocal (off the VPU/MXU critical path).
    recon_ref[...] = pl.reciprocal(1.0 + jnp.exp(-y), approx=False)


# ----------------------------------------------------------------------------
# Wrapper: builds bf16 weights, the lane-padded head / decoder weights, the
# concatenated bias slab, and calls the fused kernel.
# ----------------------------------------------------------------------------
def vade_forward(params, x, *, batch_tile=128):
    B, input_dim = x.shape
    enc = [tuple(l) for l in params["encoder"]]
    dec = [tuple(l) for l in params["decoder"]]
    n_enc, n_dec = len(enc), len(dec)
    mu_w, mu_b = params["enc_mu"]
    lv_w, lv_b = params["enc_log_sigma"]
    fin_w, fin_b = params["dec"]
    z_dim = mu_w.shape[1]
    assert enc[0][0].shape[0] == input_dim

    # fused, lane-padded mu/logvar head: (K, head_out) with head_out % 128 == 0
    k_head = mu_w.shape[0]
    head_out = _round_up(max(2 * z_dim, 128), 128)
    head_w = jnp.zeros((k_head, head_out), jnp.float32)
    head_w = head_w.at[:, :z_dim].set(mu_w).at[:, z_dim:2 * z_dim].set(lv_w)
    head_b = jnp.zeros((head_out,), jnp.float32)
    head_b = head_b.at[:z_dim].set(mu_b).at[z_dim:2 * z_dim].set(lv_b)

    # first decoder weight padded to head_out input rows (rows >= z_dim are 0)
    dw0, db0 = dec[0]
    dw0_p = jnp.zeros((head_out, dw0.shape[1]), jnp.float32).at[:z_dim, :].set(dw0)
    dec_padded = [(dw0_p, db0)] + dec[1:]

    # layer order: encoder..., head, decoder..., final
    layer_ws = [w for w, _ in enc] + [head_w] + [w for w, _ in dec_padded] + [fin_w]
    layer_bs = [b for _, b in enc] + [head_b] + [b for _, b in dec_padded] + [fin_b]

    # bf16 weights (f32 accumulation happens in-kernel via preferred_element_type)
    weights = [w.astype(jnp.bfloat16) for w in layer_ws]

    # one concatenated f32 bias slab, each segment padded so every in-kernel
    # slice starts at a 128-lane-aligned offset
    bias_slices, parts, off = [], [], 0
    for b in layer_bs:
        width = int(b.shape[0])
        bias_slices.append((off, width))
        pad_w = _round_up(width, 128)
        parts.append(jnp.pad(b.astype(jnp.float32), (0, pad_w - width)))
        off += pad_w
    bias_cat = jnp.concatenate(parts).reshape(1, -1)

    # batch tiling: one "parallel" grid axis over batch tiles.
    # TB=128 fills an MXU pass on v5e and gives one tile per v7x TensorCore at
    # B=256; v6e would marginally prefer TB=256 (single grid step).
    TB = min(batch_tile, _round_up(B, 8))
    Bp = _round_up(B, TB)
    x_p = jnp.pad(x, ((0, Bp - B), (0, 0))) if Bp != B else x

    ops = [x_p]
    specs = [pl.BlockSpec((TB, input_dim), lambda i: (i, 0))]
    for w in weights:
        ops.append(w)
        specs.append(pl.BlockSpec(w.shape, lambda i: (0, 0)))       # resident weight
    ops.append(bias_cat)
    specs.append(pl.BlockSpec(bias_cat.shape, lambda i: (0, 0)))    # resident bias slab

    # advisory cost estimate so XLA can overlap this short kernel
    flops = 2 * Bp * sum(int(w.shape[0]) * int(w.shape[1]) for w in weights)
    bytes_accessed = (x_p.size * 4 + sum(w.size * 2 for w in weights)
                      + bias_cat.size * 4 + Bp * head_out * 4 + Bp * input_dim * 4)
    cost = pl.CostEstimate(flops=int(flops),
                           transcendentals=int(Bp * input_dim),
                           bytes_accessed=int(bytes_accessed))

    kernel = functools.partial(_vade_fused_kernel, n_enc=n_enc, n_dec=n_dec,
                               bias_slices=tuple(bias_slices))
    muvar, recon = pl.pallas_call(
        kernel,
        out_shape=(
            jax.ShapeDtypeStruct((Bp, head_out), jnp.float32),
            jax.ShapeDtypeStruct((Bp, input_dim), jnp.float32),
        ),
        grid=(Bp // TB,),
        in_specs=specs,
        out_specs=(
            pl.BlockSpec((TB, head_out), lambda i: (i, 0)),
            pl.BlockSpec((TB, input_dim), lambda i: (i, 0)),
        ),
        compiler_params=pltpu.CompilerParams(
            dimension_semantics=("parallel",),     # shards batch tiles on v7x megacore
            vmem_limit_bytes=32 * 1024 * 1024,     # explicit budget (v7x-safe)
        ),
        cost_estimate=cost,
    )(*ops)

    mu = muvar[:B, :z_dim]
    logvar = muvar[:B, z_dim:2 * z_dim]
    z = mu  # reparameterize() in eval mode returns mu
    return z, recon[:B], mu, logvar


# ----------------------------------------------------------------------------
# Deterministic parameter init (mirrors nn.Linear default: U(-1/sqrt(fan_in), .))
# ----------------------------------------------------------------------------
def _init_linear(key, fan_in, fan_out):
    kw, kb = jax.random.split(key)
    bound = 1.0 / math.sqrt(fan_in)
    w = jax.random.uniform(kw, (fan_in, fan_out), jnp.float32, -bound, bound)
    b = jax.random.uniform(kb, (fan_out,), jnp.float32, -bound, bound)
    return w, b


def init_vade_params(key, input_dim, z_dim, n_centroids, encodeLayer, decodeLayer):
    n_enc = len(encodeLayer)
    n_dec = len(decodeLayer)
    keys = jax.random.split(key, n_enc + n_dec + 3)
    k = iter(keys)

    params = {}
    enc_dims = [input_dim] + list(encodeLayer)
    params["encoder"] = [
        _init_linear(next(k), enc_dims[i], enc_dims[i + 1]) for i in range(n_enc)
    ]
    params["enc_mu"] = _init_linear(next(k), encodeLayer[-1], z_dim)
    params["enc_log_sigma"] = _init_linear(next(k), encodeLayer[-1], z_dim)

    dec_dims = [z_dim] + list(decodeLayer)
    params["decoder"] = [
        _init_linear(next(k), dec_dims[i], dec_dims[i + 1]) for i in range(n_dec)
    ]
    params["dec"] = _init_linear(next(k), decodeLayer[-1], input_dim)

    # GMM parameters from create_gmmparam (not used in forward(), kept for parity)
    params["theta_p"] = jnp.ones((n_centroids,), jnp.float32) / n_centroids
    params["u_p"] = jnp.zeros((z_dim, n_centroids), jnp.float32)
    params["lambda_p"] = jnp.ones((z_dim, n_centroids), jnp.float32)
    return params


# Pure-JAX reference.  bf16_matmul=True mimics the kernel's mixed precision
# exactly (bf16 operands, f32 accumulation, f32 bias/ReLU/sigmoid).
def vade_forward_ref(params, x, bf16_matmul=False):
    def mm(a, w):
        if bf16_matmul:
            return jnp.dot(a.astype(jnp.bfloat16), w.astype(jnp.bfloat16),
                           preferred_element_type=jnp.float32)
        return jnp.dot(a, w, preferred_element_type=jnp.float32)

    h = x
    for w, b in params["encoder"]:
        h = jnp.maximum(mm(h, w) + b, 0.0)
    mu = mm(h, params["enc_mu"][0]) + params["enc_mu"][1]
    logvar = mm(h, params["enc_log_sigma"][0]) + params["enc_log_sigma"][1]
    z = mu
    d = z
    for w, b in params["decoder"]:
        d = jnp.maximum(mm(d, w) + b, 0.0)
    y = mm(d, params["dec"][0]) + params["dec"][1]
    recon = 1.0 / (1.0 + jnp.exp(-y))
    return z, recon, mu, logvar


if __name__ == "__main__":
    # Small shapes consistent with the module (scaled-down MNIST-style VaDE).
    # Batch 256 = two 128-row "parallel" tiles (one per v7x TensorCore).
    B = 256
    input_dim = 256
    z_dim = 16
    n_centroids = 10
    encodeLayer = [128, 128, 256]
    decodeLayer = [256, 128, 128]

    key = jax.random.PRNGKey(0)
    pkey, xkey = jax.random.split(key)
    params = init_vade_params(pkey, input_dim, z_dim, n_centroids,
                              encodeLayer, decodeLayer)
    # binary VAE inputs live in [0, 1]
    x = jax.random.uniform(xkey, (B, input_dim), jnp.float32)

    z, recon, mu, logvar = vade_forward(params, x)
    jax.block_until_ready((z, recon, mu, logvar))

    # (1) tight check against a reference that uses the SAME mixed precision
    #     (validates kernel plumbing: fused head, padded decoder, bias slab)
    z_m, recon_m, mu_m, logvar_m = vade_forward_ref(params, x, bf16_matmul=True)
    assert jnp.allclose(z, z_m, atol=2e-3, rtol=2e-3)
    assert jnp.allclose(mu, mu_m, atol=2e-3, rtol=2e-3)
    assert jnp.allclose(logvar, logvar_m, atol=2e-3, rtol=2e-3)
    assert jnp.allclose(recon, recon_m, atol=2e-3, rtol=2e-3)

    # (2) loose sanity check against the pure-f32 reference (bf16 quantization
    #     of matmul operands is the only difference)
    z_r, recon_r, mu_r, logvar_r = vade_forward_ref(params, x, bf16_matmul=False)
    assert jnp.allclose(z, z_r, atol=5e-2, rtol=5e-2)
    assert jnp.allclose(mu, mu_r, atol=5e-2, rtol=5e-2)
    assert jnp.allclose(logvar, logvar_r, atol=5e-2, rtol=5e-2)
    assert jnp.allclose(recon, recon_r, atol=5e-2, rtol=5e-2)

    assert z.shape == (B, z_dim) and recon.shape == (B, input_dim)
    assert mu.shape == (B, z_dim) and logvar.shape == (B, z_dim)

    print("KERNEL_OK")
</pallas_src>

<mosaic_0001>
module attributes {stable_mosaic.version = 11 : i64} {
  func.func @_vade_fused_kernel(%arg0: i32, %arg1: memref<128x256xf32, #tpu.memory_space<vmem>>, %arg2: memref<256x128xbf16, #tpu.memory_space<vmem>>, %arg3: memref<128x128xbf16, #tpu.memory_space<vmem>>, %arg4: memref<128x256xbf16, #tpu.memory_space<vmem>>, %arg5: memref<256x128xbf16, #tpu.memory_space<vmem>>, %arg6: memref<128x256xbf16, #tpu.memory_space<vmem>>, %arg7: memref<256x128xbf16, #tpu.memory_space<vmem>>, %arg8: memref<128x128xbf16, #tpu.memory_space<vmem>>, %arg9: memref<128x256xbf16, #tpu.memory_space<vmem>>, %arg10: memref<1x1408xf32, #tpu.memory_space<vmem>>, %arg11: memref<128x128xf32, #tpu.memory_space<vmem>>, %arg12: memref<128x256xf32, #tpu.memory_space<vmem>>) attributes {dimension_semantics = [#tpu.dimension_semantics<parallel>], iteration_bounds = array<i64: 2>, scalar_prefetch = 0 : i64, scratch_operands = 0 : i64, tpu.core_type = #tpu.core_type<tc>, window_params = [{transform_indices = @transform_0, window_bounds = array<i64: 128, 256>}, {pipeline_mode = #tpu.pipeline_mode<synchronous>, transform_indices = @transform_1, window_bounds = array<i64: 256, 128>}, {pipeline_mode = #tpu.pipeline_mode<synchronous>, transform_indices = @transform_2, window_bounds = array<i64: 128, 128>}, {pipeline_mode = #tpu.pipeline_mode<synchronous>, transform_indices = @transform_3, window_bounds = array<i64: 128, 256>}, {pipeline_mode = #tpu.pipeline_mode<synchronous>, transform_indices = @transform_4, window_bounds = array<i64: 256, 128>}, {pipeline_mode = #tpu.pipeline_mode<synchronous>, transform_indices = @transform_5, window_bounds = array<i64: 128, 256>}, {pipeline_mode = #tpu.pipeline_mode<synchronous>, transform_indices = @transform_6, window_bounds = array<i64: 256, 128>}, {pipeline_mode = #tpu.pipeline_mode<synchronous>, transform_indices = @transform_7, window_bounds = array<i64: 128, 128>}, {pipeline_mode = #tpu.pipeline_mode<synchronous>, transform_indices = @transform_8, window_bounds = array<i64: 128, 256>}, {pipeline_mode = #tpu.pipeline_mode<synchronous>, transform_indices = @transform_9, window_bounds = array<i64: 1, 1408>}, {transform_indices = @transform_10, window_bounds = array<i64: 128, 128>}, {transform_indices = @transform_11, window_bounds = array<i64: 128, 256>}]} {
    %c0 = arith.constant 0 : index
    %c0_0 = arith.constant 0 : index
    %0 = vector.load %arg1[%c0, %c0_0] : memref<128x256xf32, #tpu.memory_space<vmem>>, vector<128x256xf32>
    %1 = arith.truncf %0 : vector<128x256xf32> to vector<128x256xbf16>
    %c0_1 = arith.constant 0 : index
    %c0_2 = arith.constant 0 : index
    %2 = vector.load %arg2[%c0_1, %c0_2] : memref<256x128xbf16, #tpu.memory_space<vmem>>, vector<256x128xbf16>
    %cst = arith.constant dense<0.000000e+00> : vector<128x128xf32>
    %3 = tpu.matmul %1, %2, %cst {dimension_numbers = #tpu.dot_dimension_numbers<[1], [0], [0], [1], [0, 0, 1, 1], [], []>} : vector<128x256xbf16>, vector<256x128xbf16>, vector<128x128xf32> -> vector<128x128xf32>
    %c0_3 = arith.constant 0 : index
    %c0_4 = arith.constant 0 : index
    %4 = vector.load %arg10[%c0_3, %c0_4] : memref<1x1408xf32, #tpu.memory_space<vmem>>, vector<1x128xf32>
    %5 = vector.broadcast %4 : vector<1x128xf32> to vector<128x128xf32>
    %6 = arith.addf %3, %5 : vector<128x128xf32>
    %cst_5 = arith.constant 0.000000e+00 : f32
    %7 = vector.broadcast %cst_5 : f32 to vector<128x128xf32>
    %8 = arith.maximumf %6, %7 : vector<128x128xf32>
    %9 = arith.truncf %8 : vector<128x128xf32> to vector<128x128xbf16>
    %c0_6 = arith.constant 0 : index
    %c0_7 = arith.constant 0 : index
    %10 = vector.load %arg3[%c0_6, %c0_7] : memref<128x128xbf16, #tpu.memory_space<vmem>>, vector<128x128xbf16>
    %cst_8 = arith.constant dense<0.000000e+00> : vector<128x128xf32>
    %11 = tpu.matmul %9, %10, %cst_8 {dimension_numbers = #tpu.dot_dimension_numbers<[1], [0], [0], [1], [0, 0, 1, 1], [], []>} : vector<128x128xbf16>, vector<128x128xbf16>, vector<128x128xf32> -> vector<128x128xf32>
    %c0_9 = arith.constant 0 : index
    %c128 = arith.constant 128 : index
    %12 = vector.load %arg10[%c0_9, %c128] : memref<1x1408xf32, #tpu.memory_space<vmem>>, vector<1x128xf32>
    %13 = vector.broadcast %12 : vector<1x128xf32> to vector<128x128xf32>
    %14 = arith.addf %11, %13 : vector<128x128xf32>
    %cst_10 = arith.constant 0.000000e+00 : f32
    %15 = vector.broadcast %cst_10 : f32 to vector<128x128xf32>
    %16 = arith.maximumf %14, %15 : vector<128x128xf32>
    %17 = arith.truncf %16 : vector<128x128xf32> to vector<128x128xbf16>
    %c0_11 = arith.constant 0 : index
    %c0_12 = arith.constant 0 : index
    %18 = vector.load %arg4[%c0_11, %c0_12] : memref<128x256xbf16, #tpu.memory_space<vmem>>, vector<128x256xbf16>
    %cst_13 = arith.constant dense<0.000000e+00> : vector<128x256xf32>
    %19 = tpu.matmul %17, %18, %cst_13 {dimension_numbers = #tpu.dot_dimension_numbers<[1], [0], [0], [1], [0, 0, 1, 1], [], []>} : vector<128x128xbf16>, vector<128x256xbf16>, vector<128x256xf32> -> vector<128x256xf32>
    %c0_14 = arith.constant 0 : index
    %c256 = arith.constant 256 : index
    %20 = vector.load %arg10[%c0_14, %c256] : memref<1x1408xf32, #tpu.memory_space<vmem>>, vector<1x256xf32>
    %21 = vector.broadcast %20 : vector<1x256xf32> to vector<128x256xf32>
    %22 = arith.addf %19, %21 : vector<128x256xf32>
    %cst_15 = arith.constant 0.000000e+00 : f32
    %23 = vector.broadcast %cst_15 : f32 to vector<128x256xf32>
    %24 = arith.maximumf %22, %23 : vector<128x256xf32>
    %25 = arith.truncf %24 : vector<128x256xf32> to vector<128x256xbf16>
    %c0_16 = arith.constant 0 : index
    %c0_17 = arith.constant 0 : index
    %26 = vector.load %arg5[%c0_16, %c0_17] : memref<256x128xbf16, #tpu.memory_space<vmem>>, vector<256x128xbf16>
    %cst_18 = arith.constant dense<0.000000e+00> : vector<128x128xf32>
    %27 = tpu.matmul %25, %26, %cst_18 {dimension_numbers = #tpu.dot_dimension_numbers<[1], [0], [0], [1], [0, 0, 1, 1], [], []>} : vector<128x256xbf16>, vector<256x128xbf16>, vector<128x128xf32> -> vector<128x128xf32>
    %c0_19 = arith.constant 0 : index
    %c512 = arith.constant 512 : index
    %28 = vector.load %arg10[%c0_19, %c512] : memref<1x1408xf32, #tpu.memory_space<vmem>>, vector<1x128xf32>
    %29 = vector.broadcast %28 : vector<1x128xf32> to vector<128x128xf32>
    %30 = arith.addf %27, %29 : vector<128x128xf32>
    %c0_20 = arith.constant 0 : index
    %c0_21 = arith.constant 0 : index
    %31 = vector.load %arg11[%c0_20, %c0_21] : memref<128x128xf32, #tpu.memory_space<vmem>>, vector<128x128xf32>
    tpu.vector_store %arg11[%c0_20, %c0_21], %30 {strides = array<i32>} : memref<128x128xf32, #tpu.memory_space<vmem>>, vector<128x128xf32>,
    %32 = arith.truncf %30 : vector<128x128xf32> to vector<128x128xbf16>
    %c0_22 = arith.constant 0 : index
    %c0_23 = arith.constant 0 : index
    %33 = vector.load %arg6[%c0_22, %c0_23] : memref<128x256xbf16, #tpu.memory_space<vmem>>, vector<128x256xbf16>
    %cst_24 = arith.constant dense<0.000000e+00> : vector<128x256xf32>
    %34 = tpu.matmul %32, %33, %cst_24 {dimension_numbers = #tpu.dot_dimension_numbers<[1], [0], [0], [1], [0, 0, 1, 1], [], []>} : vector<128x128xbf16>, vector<128x256xbf16>, vector<128x256xf32> -> vector<128x256xf32>
    %c0_25 = arith.constant 0 : index
    %c640 = arith.constant 640 : index
    %35 = vector.load %arg10[%c0_25, %c640] : memref<1x1408xf32, #tpu.memory_space<vmem>>, vector<1x256xf32>
    %36 = vector.broadcast %35 : vector<1x256xf32> to vector<128x256xf32>
    %37 = arith.addf %34, %36 : vector<128x256xf32>
    %cst_26 = arith.constant 0.000000e+00 : f32
    %38 = vector.broadcast %cst_26 : f32 to vector<128x256xf32>
    %39 = arith.maximumf %37, %38 : vector<128x256xf32>
    %40 = arith.truncf %39 : vector<128x256xf32> to vector<128x256xbf16>
    %c0_27 = arith.constant 0 : index
    %c0_28 = arith.constant 0 : index
    %41 = vector.load %arg7[%c0_27, %c0_28] : memref<256x128xbf16, #tpu.memory_space<vmem>>, vector<256x128xbf16>
    %cst_29 = arith.constant dense<0.000000e+00> : vector<128x128xf32>
    %42 = tpu.matmul %40, %41, %cst_29 {dimension_numbers = #tpu.dot_dimension_numbers<[1], [0], [0], [1], [0, 0, 1, 1], [], []>} : vector<128x256xbf16>, vector<256x128xbf16>, vector<128x128xf32> -> vector<128x128xf32>
    %c0_30 = arith.constant 0 : index
    %c896 = arith.constant 896 : index
    %43 = vector.load %arg10[%c0_30, %c896] : memref<1x1408xf32, #tpu.memory_space<vmem>>, vector<1x128xf32>
    %44 = vector.broadcast %43 : vector<1x128xf32> to vector<128x128xf32>
    %45 = arith.addf %42, %44 : vector<128x128xf32>
    %cst_31 = arith.constant 0.000000e+00 : f32
    %46 = vector.broadcast %cst_31 : f32 to vector<128x128xf32>
    %47 = arith.maximumf %45, %46 : vector<128x128xf32>
    %48 = arith.truncf %47 : vector<128x128xf32> to vector<128x128xbf16>
    %c0_32 = arith.constant 0 : index
    %c0_33 = arith.constant 0 : index
    %49 = vector.load %arg8[%c0_32, %c0_33] : memref<128x128xbf16, #tpu.memory_space<vmem>>, vector<128x128xbf16>
    %cst_34 = arith.constant dense<0.000000e+00> : vector<128x128xf32>
    %50 = tpu.matmul %48, %49, %cst_34 {dimension_numbers = #tpu.dot_dimension_numbers<[1], [0], [0], [1], [0, 0, 1, 1], [], []>} : vector<128x128xbf16>, vector<128x128xbf16>, vector<128x128xf32> -> vector<128x128xf32>
    %c0_35 = arith.constant 0 : index
    %c1024 = arith.constant 1024 : index
    %51 = vector.load %arg10[%c0_35, %c1024] : memref<1x1408xf32, #tpu.memory_space<vmem>>, vector<1x128xf32>
    %52 = vector.broadcast %51 : vector<1x128xf32> to vector<128x128xf32>
    %53 = arith.addf %50, %52 : vector<128x128xf32>
    %cst_36 = arith.constant 0.000000e+00 : f32
    %54 = vector.broadcast %cst_36 : f32 to vector<128x128xf32>
    %55 = arith.maximumf %53, %54 : vector<128x128xf32>
    %56 = arith.truncf %55 : vector<128x128xf32> to vector<128x128xbf16>
    %c0_37 = arith.constant 0 : index
    %c0_38 = arith.constant 0 : index
    %57 = vector.load %arg9[%c0_37, %c0_38] : memref<128x256xbf16, #tpu.memory_space<vmem>>, vector<128x256xbf16>
    %cst_39 = arith.constant dense<0.000000e+00> : vector<128x256xf32>
    %58 = tpu.matmul %56, %57, %cst_39 {dimension_numbers = #tpu.dot_dimension_numbers<[1], [0], [0], [1], [0, 0, 1, 1], [], []>} : vector<128x128xbf16>, vector<128x256xbf16>, vector<128x256xf32> -> vector<128x256xf32>
    %c0_40 = arith.constant 0 : index
    %c1152 = arith.constant 1152 : index
    %59 = vector.load %arg10[%c0_40, %c1152] : memref<1x1408xf32, #tpu.memory_space<vmem>>, vector<1x256xf32>
    %60 = vector.broadcast %59 : vector<1x256xf32> to vector<128x256xf32>
    %61 = arith.addf %58, %60 : vector<128x256xf32>
    %cst_41 = arith.constant 0.000000e+00 : f32
    %62 = vector.broadcast %cst_41 : f32 to vector<128x256xf32>
    %63 = arith.subf %62, %61 : vector<128x256xf32>
    %64 = math.exp %63 : vector<128x256xf32>
    %cst_42 = arith.constant 1.000000e+00 : f32
    %65 = vector.broadcast %cst_42 : f32 to vector<128x256xf32>
    %66 = arith.addf %65, %64 : vector<128x256xf32>
    %67 = tpu.reciprocal %66 : vector<128x256xf32> -> vector<128x256xf32>
    %c0_43 = arith.constant 0 : index
    %c0_44 = arith.constant 0 : index
    %68 = vector.load %arg12[%c0_43, %c0_44] : memref<128x256xf32, #tpu.memory_space<vmem>>, vector<128x256xf32>
    tpu.vector_store %arg12[%c0_43, %c0_44], %67 {strides = array<i32>} : memref<128x256xf32, #tpu.memory_space<vmem>>, vector<128x256xf32>,
    return
  }
  func.func @transform_0(%arg0: i32) -> (i32, i32) {
    %c0_i32 = arith.constant 0 : i32
    %c0_i32_0 = arith.constant 0 : i32
    return %arg0, %c0_i32 : i32, i32
  }
  func.func @transform_1(%arg0: i32) -> (i32, i32) {
    %c0_i32 = arith.constant 0 : i32
    %c0_i32_0 = arith.constant 0 : i32
    %c0_i32_1 = arith.constant 0 : i32
    return %c0_i32, %c0_i32_0 : i32, i32
  }
  func.func @transform_2(%arg0: i32) -> (i32, i32) {
    %c0_i32 = arith.constant 0 : i32
    %c0_i32_0 = arith.constant 0 : i32
    %c0_i32_1 = arith.constant 0 : i32
    return %c0_i32, %c0_i32_0 : i32, i32
  }
  func.func @transform_3(%arg0: i32) -> (i32, i32) {
    %c0_i32 = arith.constant 0 : i32
    %c0_i32_0 = arith.constant 0 : i32
    %c0_i32_1 = arith.constant 0 : i32
    return %c0_i32, %c0_i32_0 : i32, i32
  }
  func.func @transform_4(%arg0: i32) -> (i32, i32) {
    %c0_i32 = arith.constant 0 : i32
    %c0_i32_0 = arith.constant 0 : i32
    %c0_i32_1 = arith.constant 0 : i32
    return %c0_i32, %c0_i32_0 : i32, i32
  }
  func.func @transform_5(%arg0: i32) -> (i32, i32) {
    %c0_i32 = arith.constant 0 : i32
    %c0_i32_0 = arith.constant 0 : i32
    %c0_i32_1 = arith.constant 0 : i32
    return %c0_i32, %c0_i32_0 : i32, i32
  }
  func.func @transform_6(%arg0: i32) -> (i32, i32) {
    %c0_i32 = arith.constant 0 : i32
    %c0_i32_0 = arith.constant 0 : i32
    %c0_i32_1 = arith.constant 0 : i32
    return %c0_i32, %c0_i32_0 : i32, i32
  }
  func.func @transform_7(%arg0: i32) -> (i32, i32) {
    %c0_i32 = arith.constant 0 : i32
    %c0_i32_0 = arith.constant 0 : i32
    %c0_i32_1 = arith.constant 0 : i32
    return %c0_i32, %c0_i32_0 : i32, i32
  }
  func.func @transform_8(%arg0: i32) -> (i32, i32) {
    %c0_i32 = arith.constant 0 : i32
    %c0_i32_0 = arith.constant 0 : i32
    %c0_i32_1 = arith.constant 0 : i32
    return %c0_i32, %c0_i32_0 : i32, i32
  }
  func.func @transform_9(%arg0: i32) -> (i32, i32) {
    %c0_i32 = arith.constant 0 : i32
    %c0_i32_0 = arith.constant 0 : i32
    %c0_i32_1 = arith.constant 0 : i32
    return %c0_i32, %c0_i32_0 : i32, i32
  }
  func.func @transform_10(%arg0: i32) -> (i32, i32) {
    %c0_i32 = arith.constant 0 : i32
    %c0_i32_0 = arith.constant 0 : i32
    return %arg0, %c0_i32 : i32, i32
  }
  func.func @transform_11(%arg0: i32) -> (i32, i32) {
    %c0_i32 = arith.constant 0 : i32
    %c0_i32_0 = arith.constant 0 : i32
    return %arg0, %c0_i32 : i32, i32
  }
}

</mosaic_0001>

<bundles_post_ra>
// kernel: tpu_custom_call.1
= control target key start
LH: loop header
LB: loop body
LE: loop exit
PB: predicated region body
PF: predicated region fallthrough
CT: control target
= control target key end

     0   :  { %s4959_s0 = inlined_call_operand.hbm [shape: f32[256,256], index: 0, kind: input, shape index: {}]   ;;  %s4960_s1 = inlined_call_operand.hbm [shape: bf16[256,128], index: 1, kind: input, shape index: {}]   ;;  %s4961_s2 = inlined_call_operand.hbm [shape: bf16[128,128], index: 2, kind: input, shape index: {}]   ;;  %s4962_s3 = inlined_call_operand.hbm [shape: bf16[128,256], index: 3, kind: input, shape index: {}]   ;;  %s4963_s4 = inlined_call_operand.hbm [shape: bf16[256,128], index: 4, kind: input, shape index: {}]   ;;  %s4964_s5 = inlined_call_operand.hbm [shape: bf16[128,256], index: 5, kind: input, shape index: {}]   ;;  %s4965_s6 = inlined_call_operand.hbm [shape: bf16[256,128], index: 6, kind: input, shape index: {}]   ;;  %s4966_s7 = inlined_call_operand.hbm [shape: bf16[128,128], index: 7, kind: input, shape index: {}]   ;;  %s4967_s8 = inlined_call_operand.hbm [shape: bf16[128,256], index: 8, kind: input, shape index: {}]   ;;  %s4968_s9 = inlined_call_operand.vmem [shape: f32[1,1408], index: 9, kind: input, shape index: {}]   ;;  %s4969_s10 = inlined_call_operand.hbm [shape: f32[256,128], index: 10, kind: output, shape index: {0}]   ;;  %s4970_s11 = inlined_call_operand.hbm [shape: f32[256,256], index: 11, kind: output, shape index: {1}]  }
   0x1   :  { %4984 = sst [smem:[#allocation27_spill]] %s4960_s1 }
   0x2   :  { %4985 = sst [smem:[#allocation28_spill]] %s4968_s9 }
   0x3   :  { %4986 = sst [smem:[#allocation29_spill]] %s4969_s10 }
   0x4   :  { %4987 = sst [smem:[#allocation30_spill]] %s4970_s11 }
   0x5   :  { %17 = vsyncpa [#allocation3], 0 }
   0x6   :  { %19 = vsyncpa [#allocation3 + $0x1], 0 }
   0x7   :  { %20 = vsyncpa [#allocation6], 0 }
   0x8   :  { %21 = vsyncpa [#allocation9], 0 }
   0x9   :  { %22 = vsyncpa [#allocation12], 0 }
   0xa   :  { %23 = vsyncpa [#allocation15], 0 }
   0xb   :  { %24 = vsyncpa [#allocation4], 0 }
   0xc   :  { %26 = vsyncpa [#allocation4 + $0x1], 0 }
   0xd   :  { %27 = vsyncpa [#allocation19], 0 }
   0xe   :  { %29 = vsyncpa [#allocation19 + $0x1], 0  ;;  %s4226_s17 = smov 0   ;;  %s4228_s18 = smov 0  }
   0xf   :  { %s4230_s19 = smov 0   ;;  %s4232_s20 = smov 0  }
  0x10 LB: > { %s4144_s21 = smov [#allocation5]   ;;  %s4247_s23 = sadd.s32 4294967295, %s4142_s20   ;;  %s4142_s20 = sphi %s4232_s20, %s5021_s20   ;;  %s4138_s19 = sphi %s4230_s19, %s5020_s19   ;;  %s4134_s18 = sphi %s4228_s18, %s5019_s18   ;;  %s4130_s17 = sphi %s4226_s17, %s5018_s17  }
  0x11   : > { %s319_s22 = sshll.u32 %s4144_s21, 4  ;;  %p2906_p0 = scmp.ge.s32.totalorder %s4142_s20, 1  ;;  %s4252_s22 = int_to_ptr.vmem [resolvable:$true] %s319_s22 }
  0x12   : > { %p4976_p1 = scmp.eq.s32.totalorder %s4247_s23, 0  ;;  %p307_p2 = scmp.lt.s32.totalorder %s4142_s20, 3 }
  0x13   : > { %s4145_s25 = smov [#allocation8]   ;;  %s4146_s28 = smov [#allocation11]  }
  0x14   : > { %p4254_p3 = pnand %p2906_p0, %p307_p2  ;;  %s345_s26 = sshll.u32 %s4145_s25, 4  ;;  %s4267_s26 = int_to_ptr.vmem [resolvable:$true] %s345_s26 }
  0x15   : > { %s4269_s29 = sshll.u32 %s4146_s28, 4  ;;  %s4990_s1 = sld [smem:[#allocation27_spill]]  ;;  %s372_s29 = int_to_ptr.vmem [resolvable:$true] %s4269_s29 }
  0x16   : > { %s4988_s24 = scalar_select %p4254_p3, 1, 0 }
  0x17   : > { %p3405_p5 = pneg %p4254_p3 }
  0x19   : > { %p4263_p6 = pnand %p3405_p5, %p4976_p1 }
  0x1b   : > { %s3774_s13 = scalar_lea.hbm %s4990_s1, 2048  ;;  %p4279_p8 = pneg %p4263_p6 }
  0x1c   : > { %p3775_p7 = scmp.ne.s32.totalorder %s4990_s1, %s3774_s13  ;;  %p3781_p11 = scmp.lt.u32.totalorder %s3774_s13, %s4990_s1 }
  0x1e   : > { %p3777_p9 = pnand %p4279_p8, %p3775_p7 }
  0x20   : > { %p3778_p10 = pneg %p3777_p9 }
  0x22   : > { %p3783_p12 = pnand %p3781_p11, %p3778_p10 }
  0x24   : > { %3786 = shalt.err (!%p3783_p12)
}
  0x25   : > { %s3787_s28 = scalar_lea.vmem %s4252_s22, 2048  ;;  %p3795_p5 = scmp.lt.s32.totalorder %s4252_s22, %s4252_s22 }
  0x26   : > { %p3788_p13 = scmp.ne.s32.totalorder %s4252_s22, %s3787_s28  ;;  %p3796_p4 = scmp.lt.s32.totalorder %s3787_s28, %s3787_s28 }
  0x28   : > { %p3790_p0 = pnand %p3788_p13, %p4279_p8  ;;  %p3797_p7 = por %p3796_p4, %p3795_p5 }
  0x2a   : > { %p3791_p2 = pneg %p3790_p0 }
  0x2c   : > { %p3798_p9 = pnand %p3797_p7, %p3791_p2 }
  0x2e   : > { %3801 = shalt.err (!%p3798_p9)
}
  0x2f   : > { %s4974_s30 = smov 64   ;;  %s4978_s12 = smov 4  }
  0x30   : > { %3408 = dma.hbm_to_vmem [thread:$0]  (!%p4263_p6), %s4990_s1, 2048, %s4252_s22, [#allocation6], %s4974_s30, %s4974_s30, %s4978_s12  }
  0x31   : > { %s3802_s25 = scalar_lea.hbm %s4962_s3, 2048 }
  0x32   : > { %p3803_p4 = scmp.ne.s32.totalorder %s4962_s3, %s3802_s25  ;;  %p3809_p12 = scmp.lt.u32.totalorder %s3802_s25, %s4962_s3 }
  0x34   : > { %p3805_p10 = pnand %p3803_p4, %p4279_p8 }
  0x36   : > { %p3806_p11 = pneg %p3805_p10 }
  0x38   : > { %p3811_p13 = pnand %p3809_p12, %p3806_p11 }
  0x3a   : > { %3814 = shalt.err (!%p3811_p13)
}
  0x3b   : > { %s3815_s22 = scalar_lea.vmem %s4267_s26, 2048  ;;  %p3823_p7 = scmp.lt.s32.totalorder %s4267_s26, %s4267_s26 }
  0x3c   : > { %p3816_p0 = scmp.ne.s32.totalorder %s4267_s26, %s3815_s22  ;;  %p3824_p9 = scmp.lt.s32.totalorder %s3815_s22, %s3815_s22 }
  0x3e   : > { %p3818_p2 = pnand %p3816_p0, %p4279_p8  ;;  %p3825_p4 = por %p3824_p9, %p3823_p7 }
  0x40   : > { %p3819_p5 = pneg %p3818_p2 }
  0x42   : > { %p3826_p10 = pnand %p3825_p4, %p3819_p5 }
  0x44   : > { %3829 = shalt.err (!%p3826_p10)
}
  0x45   : > { %s4980_s11 = smov 128   ;;  %s4981_s9 = smov 8  }
  0x46   : > { %3414 = dma.hbm_to_vmem [thread:$0]  (!%p4263_p6), %s4962_s3, 2048, %s4267_s26, [#allocation9], %s4980_s11, %s4980_s11, %s4981_s9  }
  0x47   : > { %s3830_s21 = scalar_lea.hbm %s4964_s5, 2048 }
  0x48   : > { %p3831_p11 = scmp.ne.s32.totalorder %s4964_s5, %s3830_s21  ;;  %p3837_p0 = scmp.lt.u32.totalorder %s3830_s21, %s4964_s5 }
  0x4a   : > { %p3833_p12 = pnand %p3831_p11, %p4279_p8 }
  0x4c   : > { %p3834_p13 = pneg %p3833_p12 }
  0x4e   : > { %p3839_p2 = pnand %p3837_p0, %p3834_p13 }
  0x50   : > { %3842 = shalt.err (!%p3839_p2)
}
  0x51   : > { %s3843_s10 = scalar_lea.vmem %s372_s29, 2048  ;;  %p3851_p4 = scmp.lt.s32.totalorder %s372_s29, %s372_s29 }
  0x52   : > { %p3844_p5 = scmp.ne.s32.totalorder %s372_s29, %s3843_s10  ;;  %p3852_p10 = scmp.lt.s32.totalorder %s3843_s10, %s3843_s10 }
  0x54   : > { %p3846_p7 = pnand %p3844_p5, %p4279_p8  ;;  %p3853_p1 = por %p3852_p10, %p3851_p4 }
  0x56   : > { %p3847_p9 = pneg %p3846_p7 }
  0x58   : > { %p3854_p3 = pnand %p3853_p1, %p3847_p9 }
  0x5a   : > { %3857 = shalt.err (!%p3854_p3)
}
  0x5b   : > { %3420 = dma.hbm_to_vmem [thread:$0]  (!%p4263_p6), %s4964_s5, 2048, %s372_s29, [#allocation12], %s4980_s11, %s4980_s11, %s4981_s9  }
  0x5c   : > { %s4151_s13 = smov [#allocation14]   ;;  %s4152_s15 = smov [#allocation7]  }
  0x5d   : > { %s397_s14 = sshll.u32 %s4151_s13, 4  ;;  %s332_s21 = sshll.u32 %s4152_s15, 4  ;;  %s398_s14 = int_to_ptr.vmem [resolvable:$true] %s397_s14  ;;  %s333_s21 = int_to_ptr.vmem [resolvable:$true] %s332_s21 }
  0x5e   : > { %s3858_s22 = scalar_lea.hbm %s4966_s7, 1024 }
  0x5f   : > { %p3859_p1 = scmp.ne.s32.totalorder %s4966_s7, %s3858_s22  ;;  %p3865_p12 = scmp.lt.u32.totalorder %s3858_s22, %s4966_s7 }
  0x61   : > { %p3861_p3 = pnand %p3859_p1, %p4279_p8 }
  0x63   : > { %p3862_p11 = pneg %p3861_p3 }
  0x65   : > { %p3867_p13 = pnand %p3865_p12, %p3862_p11 }
  0x67   : > { %3870 = shalt.err (!%p3867_p13)
}
  0x68   : > { %s3871_s29 = scalar_lea.vmem %s398_s14, 1024  ;;  %p3879_p7 = scmp.lt.s32.totalorder %s398_s14, %s398_s14 }
  0x69   : > { %p3872_p0 = scmp.ne.s32.totalorder %s398_s14, %s3871_s29  ;;  %p3880_p9 = scmp.lt.s32.totalorder %s3871_s29, %s3871_s29 }
  0x6b   : > { %p3874_p2 = pnand %p3872_p0, %p4279_p8  ;;  %p3881_p4 = por %p3880_p9, %p3879_p7 }
  0x6d   : > { %p3875_p5 = pneg %p3874_p2 }
  0x6f   : > { %p3882_p10 = pnand %p3881_p4, %p3875_p5 }
  0x71   : > { %3885 = shalt.err (!%p3882_p10)
}
  0x72   : > { %s4992_s12 = smov 4   ;;  %s4993_s30 = smov 64  }
  0x73   : > { %3426 = dma.hbm_to_vmem [thread:$0]  (!%p4263_p6), %s4966_s7, 1024, %s398_s14, [#allocation15], %s4993_s30, %s4993_s30, %s4992_s12  }
  0x74   : > { %s3886_s28 = scalar_lea.hbm %s4961_s2, 1024 }
  0x75   : > { %p3887_p1 = scmp.ne.s32.totalorder %s4961_s2, %s3886_s28  ;;  %p3893_p12 = scmp.lt.u32.totalorder %s3886_s28, %s4961_s2 }
  0x77   : > { %p3889_p3 = pnand %p3887_p1, %p4279_p8 }
  0x79   : > { %p3890_p11 = pneg %p3889_p3 }
  0x7b   : > { %p3895_p13 = pnand %p3893_p12, %p3890_p11 }
  0x7d   : > { %3898 = shalt.err (!%p3895_p13)
}
  0x7e   : > { %s3899_s1 = scalar_lea.vmem %s333_s21, 1024  ;;  %p3907_p7 = scmp.lt.s32.totalorder %s333_s21, %s333_s21 }
  0x7f   : > { %p3900_p0 = scmp.ne.s32.totalorder %s333_s21, %s3899_s1  ;;  %p3908_p9 = scmp.lt.s32.totalorder %s3899_s1, %s3899_s1 }
  0x81   : > { %p3902_p2 = pnand %p3900_p0, %p4279_p8  ;;  %p3909_p4 = por %p3908_p9, %p3907_p7 }
  0x83   : > { %p3903_p5 = pneg %p3902_p2 }
  0x85   : > { %p3910_p10 = pnand %p3909_p4, %p3903_p5 }
  0x87   : > { %3913 = shalt.err (!%p3910_p10)
}
  0x88   : > { %3411 = dma.hbm_to_vmem [thread:$0]  (!%p4263_p6), %s4961_s2, 1024, %s333_s21, [#allocation6], %s4993_s30, %s4993_s30, %s4992_s12  }
  0x89   : > { %s4153_s15 = smov [#allocation10]   ;;  %s4154_s28 = smov [#allocation13]  }
  0x8a   : > { %s358_s25 = sshll.u32 %s4153_s15, 4  ;;  %s384_s22 = sshll.u32 %s4154_s28, 4  ;;  %s359_s25 = int_to_ptr.vmem [resolvable:$true] %s358_s25  ;;  %s385_s22 = int_to_ptr.vmem [resolvable:$true] %s384_s22 }
  0x8b   : > { %s3914_s29 = scalar_lea.hbm %s4963_s4, 2048 }
  0x8c   : > { %p3915_p1 = scmp.ne.s32.totalorder %s4963_s4, %s3914_s29  ;;  %p3921_p12 = scmp.lt.u32.totalorder %s3914_s29, %s4963_s4 }
  0x8e   : > { %p3917_p3 = pnand %p3915_p1, %p4279_p8 }
  0x90   : > { %p3918_p11 = pneg %p3917_p3 }
  0x92   : > { %p3923_p13 = pnand %p3921_p12, %p3918_p11 }
  0x94   : > { %3926 = shalt.err (!%p3923_p13)
}
  0x95   : > { %s3927_s21 = scalar_lea.vmem %s359_s25, 2048  ;;  %p3935_p7 = scmp.lt.s32.totalorder %s359_s25, %s359_s25 }
  0x96   : > { %p3928_p0 = scmp.ne.s32.totalorder %s359_s25, %s3927_s21  ;;  %p3936_p9 = scmp.lt.s32.totalorder %s3927_s21, %s3927_s21 }
  0x98   : > { %p3930_p2 = pnand %p3928_p0, %p4279_p8  ;;  %p3937_p4 = por %p3936_p9, %p3935_p7 }
  0x9a   : > { %p3931_p5 = pneg %p3930_p2 }
  0x9c   : > { %p3938_p10 = pnand %p3937_p4, %p3931_p5 }
  0x9e   : > { %3941 = shalt.err (!%p3938_p10)
}
  0x9f   : > { %3417 = dma.hbm_to_vmem [thread:$0]  (!%p4263_p6), %s4963_s4, 2048, %s359_s25, [#allocation9], %s4993_s30, %s4993_s30, %s4992_s12  }
  0xa0   : > { %s3942_s28 = scalar_lea.hbm %s4965_s6, 2048 }
  0xa1   : > { %p3943_p1 = scmp.ne.s32.totalorder %s4965_s6, %s3942_s28  ;;  %p3949_p12 = scmp.lt.u32.totalorder %s3942_s28, %s4965_s6 }
  0xa3   : > { %p3945_p3 = pnand %p3943_p1, %p4279_p8 }
  0xa5   : > { %p3946_p11 = pneg %p3945_p3 }
  0xa7   : > { %p3951_p13 = pnand %p3949_p12, %p3946_p11 }
  0xa9   : > { %3954 = shalt.err (!%p3951_p13)
}
  0xaa   : > { %s3955_s14 = scalar_lea.vmem %s385_s22, 2048  ;;  %p3963_p7 = scmp.lt.s32.totalorder %s385_s22, %s385_s22 }
  0xab   : > { %p3956_p0 = scmp.ne.s32.totalorder %s385_s22, %s3955_s14  ;;  %p3964_p9 = scmp.lt.s32.totalorder %s3955_s14, %s3955_s14 }
  0xad   : > { %p3958_p2 = pnand %p3956_p0, %p4279_p8  ;;  %p3965_p4 = por %p3964_p9, %p3963_p7 }
  0xaf   : > { %p3959_p5 = pneg %p3958_p2 }
  0xb1   : > { %p3966_p10 = pnand %p3965_p4, %p3959_p5 }
  0xb3   : > { %3969 = shalt.err (!%p3966_p10)
}
  0xb4   : > { %3423 = dma.hbm_to_vmem [thread:$0]  (!%p4263_p6), %s4965_s6, 2048, %s385_s22, [#allocation12], %s4993_s30, %s4993_s30, %s4992_s12  }
  0xb5   : > { %s4155_s11 = smov [#allocation16]   ;;  %s3970_s28 = scalar_lea.hbm %s4967_s8, 2048 }
  0xb6   : > { %s410_s9 = sshll.u32 %s4155_s11, 4  ;;  %p3971_p1 = scmp.ne.s32.totalorder %s4967_s8, %s3970_s28  ;;  %s411_s9 = int_to_ptr.vmem [resolvable:$true] %s410_s9 }
  0xb7   : > { %p3977_p12 = scmp.lt.u32.totalorder %s3970_s28, %s4967_s8 }
  0xb8   : > { %p3973_p3 = pnand %p3971_p1, %p4279_p8 }
  0xba   : > { %p3974_p11 = pneg %p3973_p3 }
  0xbc   : > { %p3979_p13 = pnand %p3977_p12, %p3974_p11 }
  0xbe   : > { %3982 = shalt.err (!%p3979_p13)
}
  0xbf   : > { %s3983_s12 = scalar_lea.vmem %s411_s9, 2048  ;;  %p3991_p7 = scmp.lt.s32.totalorder %s411_s9, %s411_s9 }
  0xc0   : > { %p3984_p0 = scmp.ne.s32.totalorder %s411_s9, %s3983_s12  ;;  %p3992_p9 = scmp.lt.s32.totalorder %s3983_s12, %s3983_s12 }
  0xc2   : > { %p3986_p2 = pnand %p3984_p0, %p4279_p8  ;;  %p3993_p4 = por %p3992_p9, %p3991_p7 }
  0xc4   : > { %p3987_p5 = pneg %p3986_p2 }
  0xc6   : > { %p3994_p10 = pnand %p3993_p4, %p3987_p5 }
  0xc8   : > { %3997 = shalt.err (!%p3994_p10)
}
  0xc9   : > { %s4994_s30 = smov 8   ;;  %s4995_s22 = smov 128  }
  0xca   : > { %3429 = dma.hbm_to_vmem [thread:$0]  (!%p4263_p6), %s4967_s8, 2048, %s411_s9, [#allocation15], %s4995_s22, %s4995_s22, %s4994_s30  }
  0xcb   : > { %s2905_s27 = sadd.s32 4294967294, %s4142_s20   ;;  %s4458_s16 = sadd.s32 1, %s4142_s20  }
  0xcc   : > { %s39_s21 = ssub.s32 %s4142_s20, %s4458_s16  ;;  %s42_s11 = sadd.s32 1, %s4138_s19 }
  0xcd   : > { %p40_p8 = scmp.eq.s32.totalorder %s39_s21, 0  ;;  %p49_p1 = scmp.ne.s32.totalorder %s4138_s19, %s4134_s18 }
  0xce   : > { %p50_p3 = scmp.eq.s32.totalorder %s4142_s20, 0  ;;  %p55_p11 = scmp.ne.s32.totalorder %s4134_s18, %s4130_s17 }
  0xcf   : > { %s4469_s13 = scalar_select %p40_p8, %s4138_s19, %s42_s11  }
  0xd0   : > { %p4471_p12 = por %p50_p3, %p49_p1  ;;  %p4997_p13 = scmp.eq.s32.totalorder %s4247_s23, 0 }
  0xd1   : > { %p268_p0 = scmp.eq.s32.totalorder %s4247_s23, 1  ;;  %p274_p2 = scmp.eq.s32.totalorder %s2905_s27, 1 }
  0xd2   : > { %p4477_p6 = por %p4997_p13, %p55_p11  ;;  %p3449_p5 = scmp.lt.s32.totalorder %s4142_s20, 2 }
  0xd3   : > { %s427_s28 = sand.u32 1, %s4138_s19   ;;  %p4484_p7 = por %p268_p0, %p49_p1 }
  0xd4   : > { %p4488_p9 = por %p274_p2, %p55_p11  ;;  %s2916_s29 = sshll.u32 %s427_s28, 8 }
  0xd5   : > { %s4999_s10 = scalar_select %p4484_p7, 1, 0 }
  0xd6   : > { %s5000_s26 = scalar_select %p4488_p9, 1, 0 }
  0xd7   : > { %s3059_s1 = sshll.u32 %s4142_s20, 12  ;;  %s431_s14 = scalar_lea.vmem [#allocation2], %s2916_s29 }
  0xd8   : > { %s4496_s22 = scalar_lea.hbm %s4959_s0, %s3059_s1  ;;  %s439_s25 = sshll.u32 %s431_s14, 4  ;;  %s4498_s25 = int_to_ptr.vmem [resolvable:$true] %s439_s25 }
  0xd9   : > { %p4502_p4 = pnand %p3449_p5, %p4471_p12  ;;  %s4506_s21 = scalar_lea.sflag [#allocation3], %s427_s28 }
  0xda   : > { %s3998_s11 = scalar_lea.hbm %s4496_s22, 4096  ;;  %s4003_s15 = scalar_lea.hbm %s4959_s0, 8192 }
  0xdb   : > { %p3999_p10 = scmp.ne.s32.totalorder %s4496_s22, %s3998_s11  ;;  %p4000_p8 = pneg %p4502_p4 }
  0xdc   : > { %p4004_p11 = scmp.lt.u32.totalorder %s4496_s22, %s4959_s0  ;;  %p4005_p12 = scmp.lt.u32.totalorder %s4003_s15, %s3998_s11 }
  0xdd   : > { %p4001_p1 = pnand %p4000_p8, %p3999_p10  ;;  %p4007_p0 = scmp.lt.u32.totalorder %s3998_s11, %s4496_s22 }
  0xde   : > { %p4006_p13 = por %p4005_p12, %p4004_p11 }
  0xdf   : > { %p4002_p3 = pneg %p4001_p1 }
  0xe0   : > { %p4008_p2 = por %p4007_p0, %p4006_p13 }
  0xe2   : > { %p4009_p5 = pnand %p4008_p2, %p4002_p3 }
  0xe4   : > { %4012 = shalt.err (!%p4009_p5)
}
  0xe5   : > { %s4013_s28 = scalar_lea.vmem %s4498_s25, 4096  ;;  %s4156_s14 = smov [#allocation2]  }
  0xe6   : > { %p4014_p10 = scmp.ne.s32.totalorder %s4498_s25, %s4013_s28  ;;  %s4018_s29 = sshll.u32 %s4156_s14, 4  ;;  %s4019_s29 = int_to_ptr.vmem [resolvable:$false] %s4018_s29 }
  0xe7   : > { %s4020_s1 = scalar_lea.vmem %s4019_s29, 8192  ;;  %p4021_p7 = scmp.lt.s32.totalorder %s4498_s25, %s4019_s29 }
  0xe8   : > { %p4016_p1 = pnand %p4014_p10, %p4000_p8  ;;  %p4022_p11 = scmp.lt.s32.totalorder %s4020_s1, %s4013_s28 }
  0xea   : > { %p4017_p9 = pneg %p4016_p1  ;;  %p4023_p12 = por %p4022_p11, %p4021_p7 }
  0xec   : > { %p4024_p13 = pnand %p4023_p12, %p4017_p9 }
  0xee   : > { %4027 = shalt.err (!%p4024_p13)
}
  0xef   : > { %s4157_s11 = smov 256   ;;  %s4158_s15 = smov 16  }
  0xf0   : > { %3433 = dma.hbm_to_vmem [thread:$0]  (!%p4502_p4), %s4496_s22, 4096, %s4498_s25, %s4506_s21, %s4157_s11, %s4157_s11, %s4158_s15  }
  0xf1   : > { %p5002_p8 = scmp.ne.s32.totalorder %s4988_s24, 0 }
  0xf2   : > { %s4537_s12 = sand.u32 (!%p5002_p8), 1, %s4134_s18  }
  0xf3   : > { %451 = sbr.rel (%p5002_p8) target bundleno = 2185 (0x889), region = 60  ;;  %s4983_s30 = sshll.u32 (!%p5002_p8), %s4537_s12, 8 }
  0xf4   : > { %s454_s28 = scalar_lea.sflag (!%p5002_p8), [#allocation3], %s4537_s12  ;;  %s4543_s14 = scalar_lea.vmem (!%p5002_p8), [#allocation2], %s4983_s30 }
  0xfa   : > { %4101 = dma.done.wait (%p4477_p6), %s454_s28, 4096  }
  0xfb   : > { %4103 = vsyncadd (%p4477_p6), %s454_s28, 4294963200  ;;  %p5003_p7 = scmp.eq.s32.totalorder %s4247_s23, 0 }
  0xfd   : > { %4105 = dma.done.wait (%p5003_p7), [#allocation6], 3072   ;;  %p5004_p9 = pmov %p5003_p7 }
  0xfe   : > { %p5005_p4 = pmov %p5003_p7 }
  0xff   : > { %4107 = vsyncadd (%p5004_p9), [#allocation6], 4294964224 }
 0x100   : > { %4109 = dma.done.wait (%p5005_p4), [#allocation9], 4096   ;;  %p5006_p3 = pmov %p5005_p4 }
 0x102   : > { %4111 = vsyncadd (%p5006_p3), [#allocation9], 4294963200  ;;  %p5007_p0 = pmov %p5006_p3 }
 0x104   : > { %4113 = dma.done.wait (%p5007_p0), [#allocation12], 4096   ;;  %p5008_p2 = pmov %p5007_p0 }
 0x105   : > { %p5009_p6 = pmov %p5007_p0 }
 0x106   : > { %4115 = vsyncadd (%p5008_p2), [#allocation12], 4294963200 }
 0x107   : > { %4117 = dma.done.wait (%p5009_p6), [#allocation15], 3072   ;;  %p5010_p5 = pmov %p5007_p0 }
 0x108   : > { %v3510_v0 = vld [vmem:[#allocation5 + $0x40] sm:$0xff]   ;;  %v3512_v2 = vld [vmem:[#allocation5 + $0x48] sm:$0xff]   ;;  %v3514_v4 = vld [vmem:[#allocation5 + $0x50] sm:$0xff]   ;;  %s5011_s22 = sld [smem:[#allocation28_spill]]  ;;  %s2930_s1 = sshll.u32 %s4537_s12, 7 }
 0x109   : > { %4119 = vsyncadd (%p5010_p5), [#allocation15], 4294964224  ;;  %v3511_v1 = vld [vmem:[#allocation5] sm:$0xff]   ;;  %3063 = vmatprep.subr.bf16.mxu0 %v3510_v0  ;;  %3351 = vmatprep.subr.bf16.mxu1 %v3510_v0  ;;  %v3513_v3 = vld [vmem:[#allocation5 + $0x8] sm:$0xff]   ;;  %s4685_s28 = scalar_lea.vmem [#allocation17], %s2930_s1  ;;  %s3060_s29 = sshll.u32 %s4247_s23, 11 }
 0x10a   : > { %3064 = vmatpush3.bf16.msra.mxu0 %v3511_v1  ;;  %3359 = vmatpush3.bf16.msra.mxu1 %v3511_v1  ;;  %v3515_v5 = vld [vmem:[#allocation5 + $0x10] sm:$0xff]   ;;  %v3516_v6 = vld [vmem:[#allocation5 + $0x58] sm:$0xff]   ;;  %v3518_v8 = vld [vmem:[#allocation5 + $0x60] sm:$0xff]   ;;  %s2707_s1 = sshll.u32 %s4685_s28, 4  ;;  %s2689_s9 = scalar_lea.sflag [#allocation4], %s4537_s12  ;;  %s4805_s1 = int_to_ptr.vmem [resolvable:$true] %s2707_s1 }
 0x10b   : > { %3065 = vmatprep.subr.bf16.mxu0 %v3512_v2  ;;  %3352 = vmatprep.subr.bf16.mxu1 %v3512_v2  ;;  %v3517_v7 = vld [vmem:[#allocation5 + $0x18] sm:$0xff]   ;;  %v3519_v9 = vld [vmem:[#allocation5 + $0x20] sm:$0xff]   ;;  %v3520_v10 = vld [vmem:[#allocation5 + $0x68] sm:$0xff]   ;;  %s4028_s25 = scalar_lea.vmem %s4805_s1, 2048  ;;  %p5013_p1 = scmp.ne.s32.totalorder %s4999_s10, 0 }
 0x10c   : > { %v538_v11 = vld [vmem:[%s4543_s14 + $0x8] sm:$0xff]  ;;  %v540_v12 = vld [vmem:[%s4543_s14 + $0x18] sm:$0xff]  ;;  %v3522_v15 = vld [vmem:[#allocation5 + $0x70] sm:$0xff]   ;;  %p4029_p10 = scmp.ne.s32.totalorder %s4805_s1, %s4028_s25  ;;  %s4160_s27 = smov [#allocation17]  }
 0x10d   : > { %v570_v13 = vpack.c.bf16 %v540_v12, %v538_v11  ;;  %v3521_v14 = vld [vmem:[#allocation5 + $0x28] sm:$0xff]   ;;  %v556_v17 = vld [vmem:[%s4543_s14 + $0x98] sm:$0xff]  ;;  %v3523_v19 = vld [vmem:[#allocation5 + $0x30] sm:$0xff]   ;;  %s4032_s21 = sshll.u32 %s4160_s27, 4  ;;  %s4033_s21 = int_to_ptr.vmem [resolvable:$false] %s4032_s21 }
 0x10e   : > { %3066 = vmatpush3.bf16.msra.mxu0 %v3513_v3  ;;  %3360 = vmatpush3.bf16.msra.mxu1 %v3513_v3  ;;  %v554_v16 = vld [vmem:[%s4543_s14 + $0x88] sm:$0xff]  ;;  %v3524_v20 = vld [vmem:[#allocation5 + $0x78] sm:$0xff]   ;;  %v537_v22 = vld [vmem:[%s4543_s14] sm:$0xff]  ;;  %p4030_p11 = pnand %p4029_p10, %p5013_p1  ;;  %p4035_p13 = scmp.lt.s32.totalorder %s4805_s1, %s4033_s21 }
 0x10f   : > { %3067 = vmatprep.subr.bf16.mxu0 %v3514_v4  ;;  %3353 = vmatprep.subr.bf16.mxu1 %v3514_v4  ;;  %v578_v18 = vpack.c.bf16 %v556_v17, %v554_v16  ;;  %v3525_v21 = vld [vmem:[#allocation5 + $0x38] sm:$0xff]   ;;  %v539_v23 = vld [vmem:[%s4543_s14 + $0x10] sm:$0xff]  ;;  %v542_v24 = vld [vmem:[%s4543_s14 + $0x28] sm:$0xff] }
 0x110   : > { %752 = vmatprep.mubr.bf16.mxu0 %v570_v13  ;;  %v544_v25 = vld [vmem:[%s4543_s14 + $0x38] sm:$0xff]  ;;  %v553_v26 = vld [vmem:[%s4543_s14 + $0x80] sm:$0xff]  ;;  %v555_v27 = vld [vmem:[%s4543_s14 + $0x90] sm:$0xff]  ;;  %v569_v31 = vpack.c.bf16 %v539_v23, %v537_v22  ;;  %p4031_p12 = pneg %p4030_p11 }
 0x111   : > { %784 = vmatprep.mubr.bf16.mxu1 %v578_v18  ;;  %v558_v28 = vld [vmem:[%s4543_s14 + $0xa8] sm:$0xff]  ;;  %v560_v29 = vld [vmem:[%s4543_s14 + $0xb8] sm:$0xff]  ;;  %v3526_v30 = vld [vmem:[#allocation7] sm:$0xff]   ;;  %v572_v32 = vpack.c.bf16 %v544_v25, %v542_v24  ;;  %v577_v33 = vpack.c.bf16 %v555_v27, %v553_v26 }
 0x112   : > { %3068 = vmatpush3.bf16.msra.mxu0 %v3515_v5  ;;  %3361 = vmatpush3.bf16.msra.mxu1 %v3515_v5  ;;  %v3527_v34 = vld [vmem:[#allocation7 + $0x8] sm:$0xff]   ;;  %v580_v35 = vpack.c.bf16 %v560_v29, %v558_v28  ;;  %v541_v36 = vld [vmem:[%s4543_s14 + $0x20] sm:$0xff]  ;;  %v543_v37 = vld [vmem:[%s4543_s14 + $0x30] sm:$0xff] }
 0x113   : > { %3069 = vmatprep.subr.bf16.mxu0 %v3516_v6  ;;  %3354 = vmatprep.subr.bf16.mxu1 %v3516_v6  ;;  %v546_v38 = vld [vmem:[%s4543_s14 + $0x48] sm:$0xff]  ;;  %v548_v39 = vld [vmem:[%s4543_s14 + $0x58] sm:$0xff]  ;;  %v557_v40 = vld [vmem:[%s4543_s14 + $0xa0] sm:$0xff]  ;;  %v571_v45 = vpack.c.bf16 %v543_v37, %v541_v36 }
 0x114   : > { %v559_v41 = vld [vmem:[%s4543_s14 + $0xb0] sm:$0xff]  ;;  %v562_v42 = vld [vmem:[%s4543_s14 + $0xc8] sm:$0xff]  ;;  %v564_v43 = vld [vmem:[%s4543_s14 + $0xd8] sm:$0xff]  ;;  %v574_v46 = vpack.c.bf16 %v548_v39, %v546_v38 }
 0x115   : > { %v3528_v44 = vld [vmem:[#allocation7 + $0x10] sm:$0xff]   ;;  %v579_v47 = vpack.c.bf16 %v559_v41, %v557_v40  ;;  %v3529_v48 = vld [vmem:[#allocation7 + $0x18] sm:$0xff]   ;;  %v582_v49 = vpack.c.bf16 %v564_v43, %v562_v42  ;;  %v545_v50 = vld [vmem:[%s4543_s14 + $0x40] sm:$0xff] }
 0x116   : > { %3070 = vmatpush3.bf16.msra.mxu0 %v3517_v7  ;;  %3362 = vmatpush3.bf16.msra.mxu1 %v3517_v7  ;;  %v547_v51 = vld [vmem:[%s4543_s14 + $0x50] sm:$0xff]  ;;  %v550_v52 = vld [vmem:[%s4543_s14 + $0x68] sm:$0xff]  ;;  %v552_v53 = vld [vmem:[%s4543_s14 + $0x78] sm:$0xff] }
 0x117   : > { %3071 = vmatprep.subr.bf16.mxu0 %v3518_v8  ;;  %3355 = vmatprep.subr.bf16.mxu1 %v3518_v8  ;;  %v561_v54 = vld [vmem:[%s4543_s14 + $0xc0] sm:$0xff]  ;;  %v563_v55 = vld [vmem:[%s4543_s14 + $0xd0] sm:$0xff]  ;;  %v566_v56 = vld [vmem:[%s4543_s14 + $0xe8] sm:$0xff]  ;;  %v573_v58 = vpack.c.bf16 %v547_v51, %v545_v50  ;;  %v576_v59 = vpack.c.bf16 %v552_v53, %v550_v52 }
 0x118   : > { %v568_v57 = vld [vmem:[%s4543_s14 + $0xf8] sm:$0xff]  ;;  %v581_v60 = vpack.c.bf16 %v563_v55, %v561_v54  ;;  %v549_v62 = vld [vmem:[%s4543_s14 + $0x60] sm:$0xff]  ;;  %v551_v63 = vld [vmem:[%s4543_s14 + $0x70] sm:$0xff] }
 0x119   : > { %v584_v61 = vpack.c.bf16 %v568_v57, %v566_v56  ;;  %v565_v0 = vld [vmem:[%s4543_s14 + $0xe0] sm:$0xff]  ;;  %v567_v1 = vld [vmem:[%s4543_s14 + $0xf0] sm:$0xff]  ;;  %v575_v2 = vpack.c.bf16 %v551_v63, %v549_v62  ;;  %v3531_v5 = vld [vmem:[#allocation7 + $0x28] sm:$0xff]   ;;  %s5012_s14 = sld [smem:[#allocation29_spill]] }
 0x11a   : > { %3072 = vmatpush3.bf16.msra.mxu0 %v3519_v9  ;;  %3363 = vmatpush3.bf16.msra.mxu1 %v3519_v9  ;;  %v583_v3 = vpack.c.bf16 %v567_v1, %v565_v0  ;;  %v3530_v4 = vld [vmem:[#allocation7 + $0x20] sm:$0xff]   ;;  %v3532_v6 = vld [vmem:[#allocation7 + $0x30] sm:$0xff]   ;;  %v3533_v7 = vld [vmem:[#allocation7 + $0x38] sm:$0xff]  }
 0x11b   : > { %3073 = vmatprep.subr.bf16.mxu0 %v3520_v10  ;;  %3356 = vmatprep.subr.bf16.mxu1 %v3520_v10  ;;  %v3536_v8 = vld [vmem:[#allocation8 + $0x4] ss:$8 sps:$4 sm:$0xff]   ;;  %v4600_v10 = vld [vmem:[%s5011_s22] ss:$0 sm:$0xff] }
 0x11c   : > { %v3534_v55 = vld [vmem:[#allocation8] ss:$8 sps:$4 sm:$0xff]  }
 0x11e   : > { %3074 = vmatpush3.bf16.msra.mxu0 %v3521_v14  ;;  %3364 = vmatpush3.bf16.msra.mxu1 %v3521_v14 }
 0x11f   : > { %3075 = vmatprep.subr.bf16.mxu0 %v3522_v15  ;;  %3357 = vmatprep.subr.bf16.mxu1 %v3522_v15  ;;  %s4803_s24 = scalar_lea.hbm %s5012_s14, %s3060_s29 }
 0x122   : > { %3076 = vmatpush3.bf16.msra.mxu0 %v3523_v19  ;;  %3365 = vmatpush3.bf16.msra.mxu1 %v3523_v19 }
 0x123   : > { %3077 = vmatprep.subr.bf16.mxu0 %v3524_v20  ;;  %3358 = vmatprep.subr.bf16.mxu1 %v3524_v20 }
 0x126   : > { %3078 = vmatpush3.bf16.msra.mxu0 %v3525_v21  ;;  %3366 = vmatpush3.bf16.msra.mxu1 %v3525_v21 }
 0x127   : > { %3287 = vmatprep.subr.bf16.mxu1 %v3526_v30 }
 0x129   : > { %753 = vmatmul.mubr.bf16.vlgmr.msra.gmra.mrb[0].mxu0 %v569_v31  ;;  %785 = vmatmul.mubr.bf16.vlgmr.msra.gmra.mrb[0].mxu1 %v577_v33 }
 0x12a   : > { %760 = vmatprep.mubr.bf16.mxu0 %v572_v32  ;;  %792 = vmatprep.mubr.bf16.mxu1 %v580_v35 }
 0x12b   : > { %3288 = vmatpush3.bf16.msra.mxu1 %v3526_v30 }
 0x12c   : > { %3289 = vmatprep.subr.bf16.mxu1 %v3527_v34 }
 0x12f   : > { %3290 = vmatpush3.bf16.msra.mxu1 %v3527_v34 }
 0x130   : > { %3291 = vmatprep.subr.bf16.mxu1 %v3528_v44 }
 0x131   : > { %761 = vmatmul.mubr.bf16.gmra.mrb[4].mxu0 %v571_v45  ;;  %793 = vmatmul.mubr.bf16.gmra.mrb[4].mxu1 %v579_v47 }
 0x132   : > { %768 = vmatprep.mubr.bf16.mxu0 %v574_v46  ;;  %800 = vmatprep.mubr.bf16.mxu1 %v582_v49 }
 0x133   : > { %3292 = vmatpush3.bf16.msra.mxu1 %v3528_v44 }
 0x134   : > { %3293 = vmatprep.subr.bf16.mxu1 %v3529_v48 }
 0x137   : > { %3294 = vmatpush3.bf16.msra.mxu1 %v3529_v48 }
 0x138   : > { %3295 = vmatprep.subr.bf16.mxu1 %v3530_v4 }
 0x139   : > { %769 = vmatmul.mubr.bf16.gmra.mrb[8].mxu0 %v573_v58  ;;  %801 = vmatmul.mubr.bf16.gmra.mrb[8].mxu1 %v581_v60  ;;  %v3539_v60 = vld [vmem:[#allocation8 + $0x14] ss:$8 sps:$4 sm:$0xff]  }
 0x13a   : > { %776 = vmatprep.mubr.bf16.mxu0 %v576_v59  ;;  %808 = vmatprep.mubr.bf16.mxu1 %v584_v61 }
 0x13b   : > { %3296 = vmatpush3.bf16.msra.mxu1 %v3530_v4 }
 0x13c   : > { %3297 = vmatprep.subr.bf16.mxu1 %v3531_v5 }
 0x13f   : > { %3298 = vmatpush3.bf16.msra.mxu1 %v3531_v5 }
 0x140   : > { %3299 = vmatprep.subr.bf16.mxu1 %v3532_v6 }
 0x141   : > { %777 = vmatmul.mubr.bf16.gmra.mrb[12].mxu0 %v575_v2  ;;  %809 = vmatmul.mubr.bf16.gmra.mrb[12].mxu1 %v583_v3 }
 0x143   : > { %3300 = vmatpush3.bf16.msra.mxu1 %v3532_v6  ;;  %v3537_v6 = vld [vmem:[#allocation8 + $0x10] ss:$8 sps:$4 sm:$0xff]  }
 0x144   : > { %3301 = vmatprep.subr.bf16.mxu1 %v3533_v7 }
 0x147   : > { %3302 = vmatpush3.bf16.msra.mxu1 %v3533_v7 }
 0x148   : > { %1141 = vmatprep.subr.bf16.mxu1 %v3536_v8  ;;  %v3542_v8 = vld [vmem:[#allocation8 + $0x24] ss:$8 sps:$4 sm:$0xff]  }
 0x1fc   : > { %v3079_v9 = vpop.f32.mrb[0].mxu0  ;;  %v3103_v12 = vpop.f32.mrb[0].mxu1 }
 0x1fd   : > { %v3080_v11 = vpop.f32.mrb[1].mxu0  ;;  %v3104_v15 = vpop.f32.mrb[1].mxu1 }
 0x1fe   : > { %v3081_v13 = vadd.f32 %v3080_v11, %v3079_v9  ;;  %v3082_v14 = vpop.f32.mrb[2].mxu0  ;;  %v3105_v17 = vadd.f32 %v3104_v15, %v3103_v12  ;;  %v3106_v18 = vpop.f32.mrb[2].mxu1 }
 0x1ff   : > { %v3083_v16 = vpop.f32.mrb[3].mxu0  ;;  %v3107_v21 = vpop.f32.mrb[3].mxu1 }
 0x200   : > { %v755_v19 = vadd.f32 %v3081_v13, %v4600_v10  ;;  %v3084_v20 = vadd.f32 %v3083_v16, %v3082_v14  ;;  %v787_v22 = vadd.f32 %v3105_v17, %v4600_v10  ;;  %v3108_v23 = vadd.f32 %v3107_v21, %v3106_v18  ;;  %v3540_v18 = vld [vmem:[#allocation8 + $0x20] ss:$8 sps:$4 sm:$0xff]  }
 0x202   : > { %v758_v24 = vadd.f32 %v3084_v20, %v4600_v10  ;;  %v825_v25 = vmax.f32 %v787_v22, 0.0  ;;  %v790_v26 = vadd.f32 %v3108_v23, %v4600_v10  ;;  %v817_v27 = vmax.f32 %v755_v19, 0.0  ;;  %v3545_v23 = vld [vmem:[#allocation8 + $0x34] ss:$8 sps:$4 sm:$0xff]  }
 0x204   : > { %v818_v28 = vmax.f32 %v758_v24, 0.0  ;;  %v3085_v29 = vpop.f32.mrb[4].mxu0  ;;  %v826_v31 = vmax.f32 %v790_v26, 0.0  ;;  %v3109_v32 = vpop.f32.mrb[4].mxu1 }
 0x205   : > { %v3086_v30 = vpop.f32.mrb[5].mxu0  ;;  %v3110_v36 = vpop.f32.mrb[5].mxu1 }
 0x206   : > { %v3087_v33 = vadd.f32 %v3086_v30, %v3085_v29  ;;  %v3088_v34 = vpop.f32.mrb[6].mxu0  ;;  %v833_v35 = vpack.c.bf16 %v818_v28, %v817_v27  ;;  %v3111_v38 = vadd.f32 %v3110_v36, %v3109_v32  ;;  %v3112_v39 = vpop.f32.mrb[6].mxu1  ;;  %v4606_v40 = vpack.c.bf16 %v826_v31, %v825_v25 }
 0x207   : > { %v3089_v37 = vpop.f32.mrb[7].mxu0  ;;  %v3113_v43 = vpop.f32.mrb[7].mxu1 }
 0x208   : > { %v763_v41 = vadd.f32 %v3087_v33, %v4600_v10  ;;  %v3090_v42 = vadd.f32 %v3089_v37, %v3088_v34  ;;  %3303 = vmatprep.mubr.bf16.mxu1 %v833_v35  ;;  %v795_v44 = vadd.f32 %v3111_v38, %v4600_v10  ;;  %v3114_v45 = vadd.f32 %v3113_v43, %v3112_v39  ;;  %v3543_v33 = vld [vmem:[#allocation8 + $0x30] ss:$8 sps:$4 sm:$0xff]   ;;  %v3548_v35 = vld [vmem:[#allocation8 + $0x44] ss:$8 sps:$4 sm:$0xff]  }
 0x20a   : > { %v766_v46 = vadd.f32 %v3090_v42, %v4600_v10  ;;  %v827_v47 = vmax.f32 %v795_v44, 0.0  ;;  %v798_v48 = vadd.f32 %v3114_v45, %v4600_v10  ;;  %v819_v49 = vmax.f32 %v763_v41, 0.0  ;;  %v3546_v42 = vld [vmem:[#allocation8 + $0x40] ss:$8 sps:$4 sm:$0xff]   ;;  %v3551_v44 = vld [vmem:[#allocation8 + $0x54] ss:$8 sps:$4 sm:$0xff]  }
 0x20c   : > { %v820_v50 = vmax.f32 %v766_v46, 0.0  ;;  %v3091_v51 = vpop.f32.mrb[8].mxu0  ;;  %v828_v53 = vmax.f32 %v798_v48, 0.0  ;;  %v3115_v54 = vpop.f32.mrb[8].mxu1  ;;  %v3549_v46 = vld [vmem:[#allocation8 + $0x50] ss:$8 sps:$4 sm:$0xff]  }
 0x20d   : > { %v3092_v52 = vpop.f32.mrb[9].mxu0  ;;  %v3116_v59 = vpop.f32.mrb[9].mxu1  ;;  %v3557_v48 = vld [vmem:[#allocation8 + $0x74] ss:$8 sps:$4 sm:$0xff]  }
 0x20e   : > { %v834_v56 = vpack.c.bf16 %v820_v50, %v819_v49  ;;  %v3093_v57 = vadd.f32 %v3092_v52, %v3091_v51  ;;  %v3094_v58 = vpop.f32.mrb[10].mxu0  ;;  %v3117_v62 = vadd.f32 %v3116_v59, %v3115_v54  ;;  %v838_v63 = vpack.c.bf16 %v828_v53, %v827_v47  ;;  %v3118_v0 = vpop.f32.mrb[10].mxu1  ;;  %v3552_v47 = vld [vmem:[#allocation8 + $0x60] ss:$8 sps:$4 sm:$0xff]   ;;  %v3555_v49 = vld [vmem:[#allocation8 + $0x70] ss:$8 sps:$4 sm:$0xff]  }
 0x20f   : > { %v3095_v61 = vpop.f32.mrb[11].mxu0  ;;  %v3119_v3 = vpop.f32.mrb[11].mxu1  ;;  %v4159_v50 = vmov 0   ;;  %v3558_v51 = vld [vmem:[#allocation10 + $0x40] sm:$0xff]   ;;  %v3560_v52 = vld [vmem:[#allocation10 + $0x48] sm:$0xff]   ;;  %v3562_v54 = vld [vmem:[#allocation10 + $0x50] sm:$0xff]  }
 0x210   : > { %v771_v1 = vadd.f32 %v3093_v57, %v4600_v10  ;;  %v3096_v2 = vadd.f32 %v3095_v61, %v3094_v58  ;;  %3304 = vmatmul.mubr.bf16.vlgmr.msra.gmra.mrb[16].mxu1 %v834_v56  ;;  %v803_v4 = vadd.f32 %v3117_v62, %v4600_v10  ;;  %v3120_v5 = vadd.f32 %v3119_v3, %v3118_v0  ;;  %v3561_v53 = vld [vmem:[#allocation10 + $0x8] sm:$0xff]   ;;  %v3564_v56 = vld [vmem:[#allocation10 + $0x58] sm:$0xff]   ;;  %v3566_v58 = vld [vmem:[#allocation10 + $0x60] sm:$0xff]  }
 0x211   : > { %1142 = vmatpush1.bf16.msra.mxu1 %v3534_v55  ;;  %3143 = vmatprep.subr.bf16.mxu0 %v3558_v51  ;;  %v3563_v55 = vld [vmem:[#allocation10 + $0x10] sm:$0xff]   ;;  %v3565_v57 = vld [vmem:[#allocation10 + $0x18] sm:$0xff]   ;;  %v3567_v59 = vld [vmem:[#allocation10 + $0x20] sm:$0xff]  }
 0x212   : > { %v774_v7 = vadd.f32 %v3096_v2, %v4600_v10  ;;  %1143 = vmatprep.subr.bf16.mxu1 %v3539_v60  ;;  %v829_v9 = vmax.f32 %v803_v4, 0.0  ;;  %v806_v11 = vadd.f32 %v3120_v5, %v4600_v10  ;;  %v821_v12 = vmax.f32 %v771_v1, 0.0  ;;  %v3568_v60 = vld [vmem:[#allocation10 + $0x68] sm:$0xff]   ;;  %v2949_v62 = vld [vmem:[%s5011_s22 + $0x1] ss:$0 sm:$0xff] }
 0x213   : > { %v3569_v61 = vld [vmem:[#allocation10 + $0x28] sm:$0xff]  }
 0x214   : > { %v822_v13 = vmax.f32 %v774_v7, 0.0  ;;  %v3097_v14 = vpop.f32.mrb[12].mxu0  ;;  %v830_v16 = vmax.f32 %v806_v11, 0.0  ;;  %v3121_v17 = vpop.f32.mrb[12].mxu1 }
 0x215   : > { %v3098_v15 = vpop.f32.mrb[13].mxu0  ;;  %1144 = vmatpush1.bf16.msra.mxu1 %v3537_v6  ;;  %v3122_v22 = vpop.f32.mrb[13].mxu1 }
 0x216   : > { %v3099_v19 = vadd.f32 %v3098_v15, %v3097_v14  ;;  %v3100_v20 = vpop.f32.mrb[14].mxu0  ;;  %v835_v21 = vpack.c.bf16 %v822_v13, %v821_v12  ;;  %1145 = vmatprep.subr.bf16.mxu1 %v3542_v8  ;;  %v3123_v25 = vadd.f32 %v3122_v22, %v3121_v17  ;;  %v3124_v26 = vpop.f32.mrb[14].mxu1  ;;  %v839_v27 = vpack.c.bf16 %v830_v16, %v829_v9 }
 0x217   : > { %v3101_v24 = vpop.f32.mrb[15].mxu0  ;;  %v3125_v30 = vpop.f32.mrb[15].mxu1 }
 0x218   : > { %v779_v28 = vadd.f32 %v3099_v19, %v4600_v10  ;;  %v3102_v29 = vadd.f32 %v3101_v24, %v3100_v20  ;;  %3307 = vmatprep.mubr.bf16.mxu1 %v835_v21  ;;  %v811_v31 = vadd.f32 %v3123_v25, %v4600_v10  ;;  %v3126_v32 = vadd.f32 %v3125_v30, %v3124_v26 }
 0x219   : > { %1146 = vmatpush1.bf16.msra.mxu1 %v3540_v18 }
 0x21a   : > { %v782_v34 = vadd.f32 %v3102_v29, %v4600_v10  ;;  %1147 = vmatprep.subr.bf16.mxu1 %v3545_v23  ;;  %v831_v36 = vmax.f32 %v811_v31, 0.0  ;;  %v814_v37 = vadd.f32 %v3126_v32, %v4600_v10  ;;  %v823_v38 = vmax.f32 %v779_v28, 0.0  ;;  %v3554_v10 = vld [vmem:[#allocation8 + $0x64] ss:$8 sps:$4 sm:$0xff]  }
 0x21c   : > { %v824_v39 = vmax.f32 %v782_v34, 0.0  ;;  %v832_v41 = vmax.f32 %v814_v37, 0.0 }
 0x21d   : > { %1148 = vmatpush1.bf16.msra.mxu1 %v3543_v33 }
 0x21e   : > { %v836_v43 = vpack.c.bf16 %v824_v39, %v823_v38  ;;  %1149 = vmatprep.subr.bf16.mxu1 %v3548_v35  ;;  %v840_v45 = vpack.c.bf16 %v832_v41, %v831_v36 }
 0x220   : > { %3308 = vmatmul.mubr.bf16.gmra.mrb[20].mxu1 %v836_v43 }
 0x221   : > { %3311 = vmatprep.mubr.bf16.mxu1 %v4606_v40  ;;  %1150 = vmatpush1.bf16.msra.mxu1 %v3546_v42  ;;  %v3559_v40 = vld [vmem:[#allocation10] sm:$0xff]  }
 0x222   : > { %1151 = vmatprep.subr.bf16.mxu1 %v3551_v44  ;;  %3144 = vmatpush3.bf16.msra.mxu0 %v3559_v40 }
 0x223   : > { %3145 = vmatprep.subr.bf16.mxu0 %v3560_v52 }
 0x225   : > { %1152 = vmatpush1.bf16.msra.mxu1 %v3549_v46 }
 0x226   : > { %1153 = vmatprep.subr.bf16.mxu1 %v3554_v10  ;;  %3146 = vmatpush3.bf16.msra.mxu0 %v3561_v53 }
 0x227   : > { %3147 = vmatprep.subr.bf16.mxu0 %v3562_v54 }
 0x228   : > { %3312 = vmatmul.mubr.bf16.gmra.mrb[24].mxu1 %v838_v63 }
 0x229   : > { %3315 = vmatprep.mubr.bf16.mxu1 %v839_v27  ;;  %1154 = vmatpush1.bf16.msra.mxu1 %v3552_v47 }
 0x22a   : > { %1155 = vmatprep.subr.bf16.mxu1 %v3557_v48  ;;  %3148 = vmatpush3.bf16.msra.mxu0 %v3563_v55 }
 0x22b   : > { %3149 = vmatprep.subr.bf16.mxu0 %v3564_v56  ;;  %v3570_v56 = vld [vmem:[#allocation10 + $0x70] sm:$0xff]  }
 0x22d   : > { %1156 = vmatpush1.bf16.msra.mxu1 %v3555_v49 }
 0x22e   : > { %3150 = vmatpush3.bf16.msra.mxu0 %v3565_v57  ;;  %v3571_v57 = vld [vmem:[#allocation10 + $0x30] sm:$0xff]  }
 0x22f   : > { %3151 = vmatprep.subr.bf16.mxu0 %v3566_v58  ;;  %v3572_v58 = vld [vmem:[#allocation10 + $0x78] sm:$0xff]  }
 0x230   : > { %3316 = vmatmul.mubr.bf16.gmra.mrb[28].mxu1 %v840_v45 }
 0x231   : > { %1173 = vmatprep.mubr.bf16.mxu1 %v4159_v50 }
 0x232   : > { %3152 = vmatpush3.bf16.msra.mxu0 %v3567_v59  ;;  %v3573_v59 = vld [vmem:[#allocation10 + $0x38] sm:$0xff]  }
 0x233   : > { %3153 = vmatprep.subr.bf16.mxu0 %v3568_v60  ;;  %v3574_v60 = vld [vmem:[#allocation11] ss:$8 sps:$4 sm:$0xff]  }
 0x236   : > { %3154 = vmatpush3.bf16.msra.mxu0 %v3569_v61  ;;  %v3576_v61 = vld [vmem:[#allocation11 + $0x4] ss:$8 sps:$4 sm:$0xff]  }
 0x237   : > { %3155 = vmatprep.subr.bf16.mxu0 %v3570_v56  ;;  %1666 = vmatprep.subr.bf16.mxu1 %v3576_v61 }
 0x23a   : > { %3156 = vmatpush3.bf16.msra.mxu0 %v3571_v57 }
 0x23b   : > { %3157 = vmatprep.subr.bf16.mxu0 %v3572_v58 }
 0x23e   : > { %3158 = vmatpush3.bf16.msra.mxu0 %v3573_v59 }
 0x2e3   : > { %v3305_v63 = vpop.f32.mrb[16].mxu1 }
 0x2e4   : > { %v955_v0 = vadd.f32 %v3305_v63, %v2949_v62  ;;  %v946_v1 = vpop.f32.mrb[17].mxu1  ;;  %v3577_v63 = vld [vmem:[#allocation11 + $0x10] ss:$8 sps:$4 sm:$0xff]  }
 0x2e5   : > { %v947_v2 = vadd.f32 %v2949_v62, %v946_v1  ;;  %v3306_v3 = vpop.f32.mrb[18].mxu1  ;;  %v3580_v1 = vld [vmem:[#allocation11 + $0x20] ss:$8 sps:$4 sm:$0xff]  }
 0x2e6   : > { %v958_v4 = vadd.f32 %v3306_v3, %v2949_v62  ;;  %v949_v5 = vpop.f32.mrb[19].mxu1  ;;  %v1011_v7 = vmax.f32 %v955_v0, 0.0  ;;  %v3582_v0 = vld [vmem:[#allocation11 + $0x24] ss:$8 sps:$4 sm:$0xff]   ;;  %v3583_v3 = vld [vmem:[#allocation11 + $0x30] ss:$8 sps:$4 sm:$0xff]  }
 0x2e7   : > { %v950_v6 = vadd.f32 %v2949_v62, %v949_v5  ;;  %v1009_v9 = vmax.f32 %v947_v2, 0.0  ;;  %v3585_v2 = vld [vmem:[#allocation11 + $0x34] ss:$8 sps:$4 sm:$0xff]   ;;  %v3586_v5 = vld [vmem:[#allocation11 + $0x40] ss:$8 sps:$4 sm:$0xff]  }
 0x2e8   : > { %v1012_v8 = vmax.f32 %v958_v4, 0.0  ;;  %v3588_v4 = vld [vmem:[#allocation11 + $0x44] ss:$8 sps:$4 sm:$0xff]  }
 0x2e9   : > { %v1010_v11 = vmax.f32 %v950_v6, 0.0  ;;  %v3591_v6 = vld [vmem:[#allocation11 + $0x54] ss:$8 sps:$4 sm:$0xff]  }
 0x2ea   : > { %v1026_v12 = vpack.c.bf16 %v1012_v8, %v1011_v7  ;;  %v3589_v7 = vld [vmem:[#allocation11 + $0x50] ss:$8 sps:$4 sm:$0xff]   ;;  %v3594_v8 = vld [vmem:[#allocation11 + $0x64] ss:$8 sps:$4 sm:$0xff]  }
 0x2eb   : > { %v1025_v13 = vpack.c.bf16 %v1010_v11, %v1009_v9  ;;  %v3592_v9 = vld [vmem:[#allocation11 + $0x60] ss:$8 sps:$4 sm:$0xff]   ;;  %v1051_v11 = vlaneseq }
 0x2ed   : > { %1174 = vmatmul.mubr.bf16.vlgmr.msra.gmra.mrb[32].mxu1 %v1025_v13 }
 0x2ee   : > { %1183 = vmatprep.mubr.bf16.mxu1 %v4159_v50  ;;  %1667 = vmatpush1.bf16.msra.mxu1 %v3574_v60 }
 0x2f3   : > { %v3309_v14 = vpop.f32.mrb[20].mxu1 }
 0x2f4   : > { %v971_v15 = vadd.f32 %v3309_v14, %v2949_v62  ;;  %v962_v16 = vpop.f32.mrb[21].mxu1  ;;  %v1049_v14 = vld [vmem:[%s5011_s22 + $0x2] sm:$0x3] }
 0x2f5   : > { %v963_v17 = vadd.f32 %v2949_v62, %v962_v16  ;;  %v3310_v18 = vpop.f32.mrb[22].mxu1  ;;  %1184 = vmatmul.mubr.bf16.gmra.mrb[36].mxu1 %v1026_v12  ;;  %v1052_v12 = vshrl.u32 %v1051_v11, 7 }
 0x2f6   : > { %v974_v19 = vadd.f32 %v3310_v18, %v2949_v62  ;;  %v965_v20 = vpop.f32.mrb[23].mxu1  ;;  %1193 = vmatprep.mubr.bf16.mxu1 %v4159_v50  ;;  %v1015_v22 = vmax.f32 %v971_v15, 0.0 }
 0x2f7   : > { %v966_v21 = vadd.f32 %v2949_v62, %v965_v20  ;;  %v1013_v24 = vmax.f32 %v963_v17, 0.0  ;;  %v4633_v13 = vsub.s32 0, %v1052_v12  ;;  %v4638_v15 = vsub.s32 1, %v1052_v12 }
 0x2f8   : > { %v1016_v23 = vmax.f32 %v974_v19, 0.0 }
 0x2f9   : > { %v1014_v25 = vmax.f32 %v966_v21, 0.0  ;;  %v4641_v16 = vrot.slane %v1049_v14, %v4633_v13  ;;  %v4644_v17 = vrot.slane %v1049_v14, %v4638_v15 }
 0x2fa   : > { %v1028_v26 = vpack.c.bf16 %v1016_v23, %v1015_v22 }
 0x2fb   : > { %v1027_v27 = vpack.c.bf16 %v1014_v25, %v1013_v24  ;;  %v3313_v28 = vpop.f32.mrb[24].mxu1 }
 0x2fc   : > { %v987_v29 = vadd.f32 %v3313_v28, %v2949_v62  ;;  %v978_v30 = vpop.f32.mrb[25].mxu1 }
 0x2fd   : > { %1194 = vmatmul.mubr.bf16.gmra.mrb[40].mxu1 %v1027_v27  ;;  %v979_v31 = vadd.f32 %v2949_v62, %v978_v30  ;;  %v3314_v32 = vpop.f32.mrb[26].mxu1 }
 0x2fe   : > { %v1019_v33 = vmax.f32 %v987_v29, 0.0  ;;  %v990_v34 = vadd.f32 %v3314_v32, %v2949_v62  ;;  %v981_v35 = vpop.f32.mrb[27].mxu1  ;;  %1203 = vmatprep.mubr.bf16.mxu1 %v4159_v50 }
 0x2ff   : > { %v1017_v36 = vmax.f32 %v979_v31, 0.0  ;;  %v982_v37 = vadd.f32 %v2949_v62, %v981_v35 }
 0x300   : > { %v1020_v38 = vmax.f32 %v990_v34, 0.0 }
 0x301   : > { %v1018_v39 = vmax.f32 %v982_v37, 0.0 }
 0x302   : > { %v1030_v41 = vpack.c.bf16 %v1020_v38, %v1019_v33 }
 0x303   : > { %v1029_v42 = vpack.c.bf16 %v1018_v39, %v1017_v36  ;;  %v3317_v43 = vpop.f32.mrb[28].mxu1 }
 0x304   : > { %v1003_v44 = vadd.f32 %v3317_v43, %v2949_v62  ;;  %v994_v45 = vpop.f32.mrb[29].mxu1 }
 0x305   : > { %1204 = vmatmul.mubr.bf16.gmra.mrb[44].mxu1 %v1028_v26  ;;  %v995_v46 = vadd.f32 %v2949_v62, %v994_v45  ;;  %v3318_v10 = vpop.f32.mrb[30].mxu1 }
 0x306   : > { %1213 = vmatprep.mubr.bf16.mxu1 %v4159_v50  ;;  %v1023_v47 = vmax.f32 %v1003_v44, 0.0  ;;  %v1006_v48 = vadd.f32 %v3318_v10, %v2949_v62  ;;  %v997_v49 = vpop.f32.mrb[31].mxu1 }
 0x307   : > { %v1021_v51 = vmax.f32 %v995_v46, 0.0  ;;  %v998_v40 = vadd.f32 %v2949_v62, %v997_v49  ;;  %v3579_v62 = vld [vmem:[#allocation11 + $0x14] ss:$8 sps:$4 sm:$0xff]  }
 0x308   : > { %v1024_v52 = vmax.f32 %v1006_v48, 0.0  ;;  %1668 = vmatprep.subr.bf16.mxu1 %v3579_v62 }
 0x309   : > { %v1022_v53 = vmax.f32 %v998_v40, 0.0  ;;  %1669 = vmatpush1.bf16.msra.mxu1 %v3577_v63 }
 0x30a   : > { %v1032_v54 = vpack.c.bf16 %v1024_v52, %v1023_v47  ;;  %1670 = vmatprep.subr.bf16.mxu1 %v3582_v0 }
 0x30b   : > { %v1031_v55 = vpack.c.bf16 %v1022_v53, %v1021_v51 }
 0x30d   : > { %1214 = vmatmul.mubr.bf16.gmra.mrb[48].mxu1 %v1029_v42 }
 0x30e   : > { %1223 = vmatprep.mubr.bf16.mxu1 %v4159_v50  ;;  %1671 = vmatpush1.bf16.msra.mxu1 %v3580_v1 }
 0x30f   : > { %1672 = vmatprep.subr.bf16.mxu1 %v3585_v2 }
 0x312   : > { %1673 = vmatpush1.bf16.msra.mxu1 %v3583_v3 }
 0x313   : > { %1674 = vmatprep.subr.bf16.mxu1 %v3588_v4 }
 0x315   : > { %1224 = vmatmul.mubr.bf16.gmra.mrb[52].mxu1 %v1030_v41 }
 0x316   : > { %1233 = vmatprep.mubr.bf16.mxu1 %v4159_v50  ;;  %1675 = vmatpush1.bf16.msra.mxu1 %v3586_v5 }
 0x317   : > { %1676 = vmatprep.subr.bf16.mxu1 %v3591_v6 }
 0x31a   : > { %1677 = vmatpush1.bf16.msra.mxu1 %v3589_v7 }
 0x31b   : > { %1678 = vmatprep.subr.bf16.mxu1 %v3594_v8 }
 0x31d   : > { %1234 = vmatmul.mubr.bf16.gmra.mrb[56].mxu1 %v1031_v55 }
 0x31e   : > { %1243 = vmatprep.mubr.bf16.mxu1 %v4159_v50  ;;  %1679 = vmatpush1.bf16.msra.mxu1 %v3592_v9 }
 0x325   : > { %1244 = vmatmul.mubr.bf16.gmra.mrb[60].mxu1 %v1032_v54 }
 0x326   : > { %1698 = vmatprep.mubr.bf16.mxu1 %v4159_v50 }
 0x3c0   : > { %v1175_v18 = vpop.f32.mrb[32].mxu1 }
 0x3c1   : > { %v1176_v19 = vadd.f32 %v1175_v18, %v4641_v16  ;;  %v1177_v20 = vpop.f32.mrb[33].mxu1 }
 0x3c2   : > { %v1178_v21 = vadd.f32 %v1177_v20, %v4644_v17  ;;  %v1179_v22 = vpop.f32.mrb[34].mxu1 }
 0x3c3   : > { %v1180_v23 = vadd.f32 %v1179_v22, %v4641_v16  ;;  %v1181_v24 = vpop.f32.mrb[35].mxu1  ;;  %v1254_v26 = vmax.f32 %v1176_v19, 0.0 }
 0x3c4   : > { %v1182_v25 = vadd.f32 %v1181_v24, %v4644_v17  ;;  %v1255_v28 = vmax.f32 %v1178_v21, 0.0 }
 0x3c5   : > { %v1256_v27 = vmax.f32 %v1180_v23, 0.0 }
 0x3c6   : > { %v1257_v29 = vmax.f32 %v1182_v25, 0.0 }
 0x3c7   : > { %v1286_v30 = vpack.c.bf16 %v1256_v27, %v1254_v26 }
 0x3c8   : > { %v1287_v31 = vpack.c.bf16 %v1257_v29, %v1255_v28  ;;  %v1185_v32 = vpop.f32.mrb[36].mxu1 }
 0x3c9   : > { %v1186_v33 = vadd.f32 %v1185_v32, %v4641_v16  ;;  %v1187_v34 = vpop.f32.mrb[37].mxu1 }
 0x3ca   : > { %v1188_v35 = vadd.f32 %v1187_v34, %v4644_v17  ;;  %v1189_v36 = vpop.f32.mrb[38].mxu1  ;;  %1469 = vmatprep.mubr.bf16.mxu0 %v1287_v31 }
 0x3cb   : > { %v1190_v37 = vadd.f32 %v1189_v36, %v4641_v16  ;;  %v1191_v38 = vpop.f32.mrb[39].mxu1  ;;  %1470 = vmatmul.mubr.bf16.vlgmr.msra.gmra.mrb[16].mxu0 %v1286_v30  ;;  %v1258_v41 = vmax.f32 %v1186_v33, 0.0 }
 0x3cc   : > { %v1192_v39 = vadd.f32 %v1191_v38, %v4644_v17  ;;  %v1259_v43 = vmax.f32 %v1188_v35, 0.0 }
 0x3cd   : > { %v1260_v42 = vmax.f32 %v1190_v37, 0.0 }
 0x3ce   : > { %v1261_v44 = vmax.f32 %v1192_v39, 0.0 }
 0x3cf   : > { %v1288_v45 = vpack.c.bf16 %v1260_v42, %v1258_v41 }
 0x3d0   : > { %v1289_v46 = vpack.c.bf16 %v1261_v44, %v1259_v43  ;;  %v1195_v10 = vpop.f32.mrb[40].mxu1 }
 0x3d1   : > { %v1196_v47 = vadd.f32 %v1195_v10, %v4641_v16  ;;  %v1197_v48 = vpop.f32.mrb[41].mxu1 }
 0x3d2   : > { %v1198_v49 = vadd.f32 %v1197_v48, %v4644_v17  ;;  %v1199_v51 = vpop.f32.mrb[42].mxu1  ;;  %1477 = vmatprep.mubr.bf16.mxu0 %v1289_v46 }
 0x3d3   : > { %v1200_v40 = vadd.f32 %v1199_v51, %v4641_v16  ;;  %v1201_v52 = vpop.f32.mrb[43].mxu1  ;;  %1478 = vmatmul.mubr.bf16.gmra.mrb[20].mxu0 %v1288_v45  ;;  %v1262_v54 = vmax.f32 %v1196_v47, 0.0 }
 0x3d4   : > { %v1202_v53 = vadd.f32 %v1201_v52, %v4644_v17  ;;  %v1263_v56 = vmax.f32 %v1198_v49, 0.0 }
 0x3d5   : > { %v1264_v55 = vmax.f32 %v1200_v40, 0.0 }
 0x3d6   : > { %v1265_v57 = vmax.f32 %v1202_v53, 0.0 }
 0x3d7   : > { %v1290_v58 = vpack.c.bf16 %v1264_v55, %v1262_v54 }
 0x3d8   : > { %v1291_v59 = vpack.c.bf16 %v1265_v57, %v1263_v56  ;;  %v1205_v60 = vpop.f32.mrb[44].mxu1 }
 0x3d9   : > { %v1206_v61 = vadd.f32 %v1205_v60, %v4641_v16  ;;  %v1207_v62 = vpop.f32.mrb[45].mxu1 }
 0x3da   : > { %v1208_v63 = vadd.f32 %v1207_v62, %v4644_v17  ;;  %v1209_v0 = vpop.f32.mrb[46].mxu1  ;;  %1485 = vmatprep.mubr.bf16.mxu0 %v1291_v59 }
 0x3db   : > { %v1210_v1 = vadd.f32 %v1209_v0, %v4641_v16  ;;  %v1211_v2 = vpop.f32.mrb[47].mxu1  ;;  %1486 = vmatmul.mubr.bf16.gmra.mrb[24].mxu0 %v1290_v58  ;;  %v1266_v4 = vmax.f32 %v1206_v61, 0.0 }
 0x3dc   : > { %v1212_v3 = vadd.f32 %v1211_v2, %v4644_v17  ;;  %v1267_v6 = vmax.f32 %v1208_v63, 0.0 }
 0x3dd   : > { %v1268_v5 = vmax.f32 %v1210_v1, 0.0 }
 0x3de   : > { %v1269_v7 = vmax.f32 %v1212_v3, 0.0 }
 0x3df   : > { %v1292_v8 = vpack.c.bf16 %v1268_v5, %v1266_v4 }
 0x3e0   : > { %v1293_v9 = vpack.c.bf16 %v1269_v7, %v1267_v6  ;;  %v1215_v11 = vpop.f32.mrb[48].mxu1  ;;  %v3597_v7 = vld [vmem:[#allocation11 + $0x74] ss:$8 sps:$4 sm:$0xff]  }
 0x3e1   : > { %v1216_v12 = vadd.f32 %v1215_v11, %v4641_v16  ;;  %v1217_v14 = vpop.f32.mrb[49].mxu1  ;;  %1680 = vmatprep.subr.bf16.mxu1 %v3597_v7  ;;  %v3599_v11 = vld [vmem:[#allocation13] sm:$0xff]  }
 0x3e2   : > { %v1218_v18 = vadd.f32 %v1217_v14, %v4644_v17  ;;  %v1219_v19 = vpop.f32.mrb[50].mxu1  ;;  %1493 = vmatprep.mubr.bf16.mxu0 %v1293_v9  ;;  %v3598_v9 = vld [vmem:[#allocation13 + $0x40] sm:$0xff]   ;;  %v3603_v14 = vld [vmem:[#allocation13 + $0x10] sm:$0xff]  }
 0x3e3   : > { %v1220_v20 = vadd.f32 %v1219_v19, %v4641_v16  ;;  %v1221_v21 = vpop.f32.mrb[51].mxu1  ;;  %1494 = vmatmul.mubr.bf16.gmra.mrb[28].mxu0 %v1292_v8  ;;  %v1270_v23 = vmax.f32 %v1216_v12, 0.0  ;;  %v3595_v8 = vld [vmem:[#allocation11 + $0x70] ss:$8 sps:$4 sm:$0xff]   ;;  %v3600_v12 = vld [vmem:[#allocation13 + $0x48] sm:$0xff]   ;;  %3207 = vmatprep.subr.bf16.mxu0 %v3598_v9 }
 0x3e4   : > { %v1222_v22 = vadd.f32 %v1221_v21, %v4644_v17  ;;  %v1271_v25 = vmax.f32 %v1218_v18, 0.0  ;;  %1681 = vmatpush1.bf16.msra.mxu1 %v3595_v8  ;;  %3208 = vmatpush3.bf16.msra.mxu0 %v3599_v11  ;;  %v3604_v18 = vld [vmem:[#allocation13 + $0x58] sm:$0xff]   ;;  %v3607_v21 = vld [vmem:[#allocation13 + $0x20] sm:$0xff]  }
 0x3e5   : > { %v1272_v24 = vmax.f32 %v1220_v20, 0.0  ;;  %3209 = vmatprep.subr.bf16.mxu0 %v3600_v12  ;;  %v3605_v19 = vld [vmem:[#allocation13 + $0x18] sm:$0xff]   ;;  %v3606_v20 = vld [vmem:[#allocation13 + $0x60] sm:$0xff]  }
 0x3e6   : > { %v1273_v26 = vmax.f32 %v1222_v22, 0.0  ;;  %v3608_v22 = vld [vmem:[#allocation13 + $0x68] sm:$0xff]  }
 0x3e7   : > { %v1294_v27 = vpack.c.bf16 %v1272_v24, %v1270_v23  ;;  %v3609_v23 = vld [vmem:[#allocation13 + $0x28] sm:$0xff]   ;;  %v3610_v24 = vld [vmem:[#allocation13 + $0x70] sm:$0xff]  }
 0x3e8   : > { %v1295_v28 = vpack.c.bf16 %v1273_v26, %v1271_v25  ;;  %v1225_v29 = vpop.f32.mrb[52].mxu1  ;;  %v3611_v25 = vld [vmem:[#allocation13 + $0x30] sm:$0xff]  }
 0x3e9   : > { %v1226_v30 = vadd.f32 %v1225_v29, %v4641_v16  ;;  %v1227_v31 = vpop.f32.mrb[53].mxu1 }
 0x3ea   : > { %v1228_v32 = vadd.f32 %v1227_v31, %v4644_v17  ;;  %v1229_v33 = vpop.f32.mrb[54].mxu1  ;;  %1501 = vmatprep.mubr.bf16.mxu0 %v1295_v28 }
 0x3eb   : > { %v1230_v34 = vadd.f32 %v1229_v33, %v4641_v16  ;;  %v1231_v35 = vpop.f32.mrb[55].mxu1  ;;  %1502 = vmatmul.mubr.bf16.gmra.mrb[32].mxu0 %v1294_v27  ;;  %v1274_v37 = vmax.f32 %v1226_v30, 0.0  ;;  %v4682_v27 = vld [vmem:[%s5011_s22 + $0x4] ss:$0 sm:$0xff] }
 0x3ec   : > { %v1232_v36 = vadd.f32 %v1231_v35, %v4644_v17  ;;  %v1275_v39 = vmax.f32 %v1228_v32, 0.0 }
 0x3ed   : > { %v1276_v38 = vmax.f32 %v1230_v34, 0.0 }
 0x3ee   : > { %v1277_v41 = vmax.f32 %v1232_v36, 0.0 }
 0x3ef   : > { %v1296_v42 = vpack.c.bf16 %v1276_v38, %v1274_v37 }
 0x3f0   : > { %v1297_v43 = vpack.c.bf16 %v1277_v41, %v1275_v39  ;;  %v1235_v44 = vpop.f32.mrb[56].mxu1 }
 0x3f1   : > { %v1236_v45 = vadd.f32 %v1235_v44, %v4641_v16  ;;  %v1237_v46 = vpop.f32.mrb[57].mxu1 }
 0x3f2   : > { %v1238_v10 = vadd.f32 %v1237_v46, %v4644_v17  ;;  %v1239_v47 = vpop.f32.mrb[58].mxu1  ;;  %1509 = vmatprep.mubr.bf16.mxu0 %v1297_v43 }
 0x3f3   : > { %v1240_v48 = vadd.f32 %v1239_v47, %v4641_v16  ;;  %v1241_v49 = vpop.f32.mrb[59].mxu1  ;;  %1510 = vmatmul.mubr.bf16.gmra.mrb[36].mxu0 %v1296_v42  ;;  %v1278_v40 = vmax.f32 %v1236_v45, 0.0 }
 0x3f4   : > { %v1242_v51 = vadd.f32 %v1241_v49, %v4644_v17  ;;  %v1279_v53 = vmax.f32 %v1238_v10, 0.0 }
 0x3f5   : > { %v1280_v52 = vmax.f32 %v1240_v48, 0.0 }
 0x3f6   : > { %v1281_v54 = vmax.f32 %v1242_v51, 0.0 }
 0x3f7   : > { %v1298_v55 = vpack.c.bf16 %v1280_v52, %v1278_v40 }
 0x3f8   : > { %v1299_v56 = vpack.c.bf16 %v1281_v54, %v1279_v53  ;;  %v1245_v57 = vpop.f32.mrb[60].mxu1 }
 0x3f9   : > { %v1246_v58 = vadd.f32 %v1245_v57, %v4641_v16  ;;  %v1247_v59 = vpop.f32.mrb[61].mxu1 }
 0x3fa   : > { %v1248_v60 = vadd.f32 %v1247_v59, %v4644_v17  ;;  %v1249_v61 = vpop.f32.mrb[62].mxu1  ;;  %1517 = vmatprep.mubr.bf16.mxu0 %v1299_v56 }
 0x3fb   : > { %v1250_v62 = vadd.f32 %v1249_v61, %v4641_v16  ;;  %v1251_v63 = vpop.f32.mrb[63].mxu1  ;;  %1518 = vmatmul.mubr.bf16.gmra.mrb[40].mxu0 %v1298_v55  ;;  %v1282_v1 = vmax.f32 %v1246_v58, 0.0  ;;  %v3601_v16 = vld [vmem:[#allocation13 + $0x8] sm:$0xff]  }
 0x3fc   : > { %v1252_v0 = vadd.f32 %v1251_v63, %v4644_v17  ;;  %v1283_v3 = vmax.f32 %v1248_v60, 0.0  ;;  %v3602_v17 = vld [vmem:[#allocation13 + $0x50] sm:$0xff]   ;;  %3210 = vmatpush3.bf16.msra.mxu0 %v3601_v16 }
 0x3fd   : > { %v1284_v2 = vmax.f32 %v1250_v62, 0.0  ;;  %3211 = vmatprep.subr.bf16.mxu0 %v3602_v17 }
 0x3fe   : > { %v1285_v4 = vmax.f32 %v1252_v0, 0.0 }
 0x3ff   : > { %v1300_v5 = vpack.c.bf16 %v1284_v2, %v1282_v1 }
 0x400   : > { %v1301_v6 = vpack.c.bf16 %v1285_v4, %v1283_v3  ;;  %3212 = vmatpush3.bf16.msra.mxu0 %v3603_v14 }
 0x401   : > { %3213 = vmatprep.subr.bf16.mxu0 %v3604_v18 }
 0x402   : > { %1525 = vmatprep.mubr.bf16.mxu0 %v1301_v6 }
 0x403   : > { %1526 = vmatmul.mubr.bf16.gmra.mrb[44].mxu0 %v1300_v5 }
 0x404   : > { %3214 = vmatpush3.bf16.msra.mxu0 %v3605_v19 }
 0x405   : > { %3215 = vmatprep.subr.bf16.mxu0 %v3606_v20 }
 0x408   : > { %3216 = vmatpush3.bf16.msra.mxu0 %v3607_v21 }
 0x409   : > { %3217 = vmatprep.subr.bf16.mxu0 %v3608_v22 }
 0x40c   : > { %3218 = vmatpush3.bf16.msra.mxu0 %v3609_v23 }
 0x40d   : > { %3219 = vmatprep.subr.bf16.mxu0 %v3610_v24 }
 0x410   : > { %3220 = vmatpush3.bf16.msra.mxu0 %v3611_v25 }
 0x49e   : > { %v3159_v26 = vpop.f32.mrb[16].mxu0 }
 0x49f   : > { %v3160_v28 = vpop.f32.mrb[17].mxu0 }
 0x4a0   : > { %v3161_v29 = vadd.f32 %v3160_v28, %v3159_v26  ;;  %v3162_v30 = vpop.f32.mrb[18].mxu0 }
 0x4a1   : > { %v3163_v31 = vpop.f32.mrb[19].mxu0 }
 0x4a2   : > { %v1472_v32 = vadd.f32 %v3161_v29, %v4682_v27  ;;  %v3164_v33 = vadd.f32 %v3163_v31, %v3162_v30 }
 0x4a4   : > { %1534 = vst [vmem:[%s4685_s28] sm:$0xff] %v1472_v32  ;;  %v1475_v34 = vadd.f32 %v3164_v33, %v4682_v27 }
 0x4a6   : > { %1535 = vst [vmem:[%s4685_s28 + $0x8] sm:$0xff] %v1475_v34  ;;  %v1550_v35 = vpack.c.bf16 %v1475_v34, %v1472_v32  ;;  %v3165_v36 = vpop.f32.mrb[20].mxu0 }
 0x4a7   : > { %v3166_v37 = vpop.f32.mrb[21].mxu0 }
 0x4a8   : > { %v3167_v38 = vadd.f32 %v3166_v37, %v3165_v36  ;;  %v3168_v39 = vpop.f32.mrb[22].mxu0  ;;  %1699 = vmatmul.mubr.bf16.vlgmr.msra.gmra.mrb[64].mxu1 %v1550_v35 }
 0x4a9   : > { %v3169_v41 = vpop.f32.mrb[23].mxu0  ;;  %1708 = vmatprep.mubr.bf16.mxu1 %v4159_v50 }
 0x4aa   : > { %v1480_v42 = vadd.f32 %v3167_v38, %v4682_v27  ;;  %v3170_v43 = vadd.f32 %v3169_v41, %v3168_v39  ;;  %v3612_v39 = vld [vmem:[#allocation13 + $0x78] sm:$0xff]  }
 0x4ab   : > { %v3613_v41 = vld [vmem:[#allocation13 + $0x38] sm:$0xff]   ;;  %3221 = vmatprep.subr.bf16.mxu0 %v3612_v39 }
 0x4ac   : > { %1536 = vst [vmem:[%s4685_s28 + $0x10] sm:$0xff] %v1480_v42  ;;  %v1483_v44 = vadd.f32 %v3170_v43, %v4682_v27  ;;  %3222 = vmatpush3.bf16.msra.mxu0 %v3613_v41  ;;  %v3615_v43 = vld [vmem:[#allocation14 + $0x8] sm:$0xff]  }
 0x4ae   : > { %1537 = vst [vmem:[%s4685_s28 + $0x18] sm:$0xff] %v1483_v44  ;;  %v3171_v45 = vpop.f32.mrb[24].mxu0  ;;  %v1551_v46 = vpack.c.bf16 %v1483_v44, %v1480_v42  ;;  %v3614_v42 = vld [vmem:[#allocation14] sm:$0xff]   ;;  %v3616_v44 = vld [vmem:[#allocation14 + $0x10] sm:$0xff]  }
 0x4af   : > { %v3172_v10 = vpop.f32.mrb[25].mxu0  ;;  %3319 = vmatprep.subr.bf16.mxu1 %v3614_v42 }
 0x4b0   : > { %v3173_v47 = vadd.f32 %v3172_v10, %v3171_v45  ;;  %v3174_v48 = vpop.f32.mrb[26].mxu0  ;;  %1709 = vmatmul.mubr.bf16.gmra.mrb[68].mxu1 %v1551_v46  ;;  %v3617_v45 = vld [vmem:[#allocation14 + $0x18] sm:$0xff]   ;;  %v3618_v46 = vld [vmem:[#allocation14 + $0x20] sm:$0xff]  }
 0x4b1   : > { %v3175_v49 = vpop.f32.mrb[27].mxu0  ;;  %1718 = vmatprep.mubr.bf16.mxu1 %v4159_v50  ;;  %3320 = vmatpush3.bf16.msra.mxu1 %v3614_v42  ;;  %v1574_v10 = vld [vmem:[%s5011_s22 + $0x5] sm:$0x3] }
 0x4b2   : > { %v1488_v51 = vadd.f32 %v3173_v47, %v4682_v27  ;;  %v3176_v40 = vadd.f32 %v3175_v49, %v3174_v48  ;;  %3321 = vmatprep.subr.bf16.mxu1 %v3615_v43  ;;  %v4729_v47 = vrot.slane %v1574_v10, %v4633_v13  ;;  %v4732_v48 = vrot.slane %v1574_v10, %v4638_v15 }
 0x4b4   : > { %1538 = vst [vmem:[%s4685_s28 + $0x20] sm:$0xff] %v1488_v51  ;;  %v1491_v52 = vadd.f32 %v3176_v40, %v4682_v27 }
 0x4b5   : > { %3322 = vmatpush3.bf16.msra.mxu1 %v3615_v43 }
 0x4b6   : > { %1539 = vst [vmem:[%s4685_s28 + $0x28] sm:$0xff] %v1491_v52  ;;  %v3177_v53 = vpop.f32.mrb[28].mxu0  ;;  %v1552_v54 = vpack.c.bf16 %v1491_v52, %v1488_v51  ;;  %3323 = vmatprep.subr.bf16.mxu1 %v3616_v44 }
 0x4b7   : > { %v3178_v55 = vpop.f32.mrb[29].mxu0 }
 0x4b8   : > { %v3179_v56 = vadd.f32 %v3178_v55, %v3177_v53  ;;  %v3180_v57 = vpop.f32.mrb[30].mxu0  ;;  %1719 = vmatmul.mubr.bf16.gmra.mrb[72].mxu1 %v1552_v54 }
 0x4b9   : > { %v3181_v58 = vpop.f32.mrb[31].mxu0  ;;  %1728 = vmatprep.mubr.bf16.mxu1 %v4159_v50  ;;  %3324 = vmatpush3.bf16.msra.mxu1 %v3616_v44 }
 0x4ba   : > { %v1496_v59 = vadd.f32 %v3179_v56, %v4682_v27  ;;  %v3182_v60 = vadd.f32 %v3181_v58, %v3180_v57  ;;  %3325 = vmatprep.subr.bf16.mxu1 %v3617_v45 }
 0x4bc   : > { %1540 = vst [vmem:[%s4685_s28 + $0x30] sm:$0xff] %v1496_v59  ;;  %v1499_v61 = vadd.f32 %v3182_v60, %v4682_v27 }
 0x4bd   : > { %3326 = vmatpush3.bf16.msra.mxu1 %v3617_v45 }
 0x4be   : > { %1541 = vst [vmem:[%s4685_s28 + $0x38] sm:$0xff] %v1499_v61  ;;  %v3183_v62 = vpop.f32.mrb[32].mxu0  ;;  %v1553_v63 = vpack.c.bf16 %v1499_v61, %v1496_v59  ;;  %3327 = vmatprep.subr.bf16.mxu1 %v3618_v46 }
 0x4bf   : > { %v3184_v0 = vpop.f32.mrb[33].mxu0 }
 0x4c0   : > { %v3185_v1 = vadd.f32 %v3184_v0, %v3183_v62  ;;  %v3186_v2 = vpop.f32.mrb[34].mxu0  ;;  %1729 = vmatmul.mubr.bf16.gmra.mrb[76].mxu1 %v1553_v63 }
 0x4c1   : > { %v3187_v3 = vpop.f32.mrb[35].mxu0  ;;  %1738 = vmatprep.mubr.bf16.mxu1 %v4159_v50  ;;  %3328 = vmatpush3.bf16.msra.mxu1 %v3618_v46 }
 0x4c2   : > { %v1504_v4 = vadd.f32 %v3185_v1, %v4682_v27  ;;  %v3188_v5 = vadd.f32 %v3187_v3, %v3186_v2 }
 0x4c4   : > { %1542 = vst [vmem:[%s4685_s28 + $0x40] sm:$0xff] %v1504_v4  ;;  %v1507_v6 = vadd.f32 %v3188_v5, %v4682_v27 }
 0x4c6   : > { %1543 = vst [vmem:[%s4685_s28 + $0x48] sm:$0xff] %v1507_v6  ;;  %v3189_v7 = vpop.f32.mrb[36].mxu0  ;;  %v1554_v8 = vpack.c.bf16 %v1507_v6, %v1504_v4 }
 0x4c7   : > { %v3190_v9 = vpop.f32.mrb[37].mxu0 }
 0x4c8   : > { %v3191_v11 = vadd.f32 %v3190_v9, %v3189_v7  ;;  %v3192_v12 = vpop.f32.mrb[38].mxu0  ;;  %1739 = vmatmul.mubr.bf16.gmra.mrb[80].mxu1 %v1554_v8 }
 0x4c9   : > { %v3193_v16 = vpop.f32.mrb[39].mxu0  ;;  %1748 = vmatprep.mubr.bf16.mxu1 %v4159_v50 }
 0x4ca   : > { %v1512_v17 = vadd.f32 %v3191_v11, %v4682_v27  ;;  %v3194_v14 = vadd.f32 %v3193_v16, %v3192_v12 }
 0x4cc   : > { %1544 = vst [vmem:[%s4685_s28 + $0x50] sm:$0xff] %v1512_v17  ;;  %v1515_v18 = vadd.f32 %v3194_v14, %v4682_v27 }
 0x4ce   : > { %1545 = vst [vmem:[%s4685_s28 + $0x58] sm:$0xff] %v1515_v18  ;;  %v3195_v19 = vpop.f32.mrb[40].mxu0  ;;  %v1555_v20 = vpack.c.bf16 %v1515_v18, %v1512_v17 }
 0x4cf   : > { %v3196_v21 = vpop.f32.mrb[41].mxu0 }
 0x4d0   : > { %v3197_v22 = vadd.f32 %v3196_v21, %v3195_v19  ;;  %v3198_v23 = vpop.f32.mrb[42].mxu0  ;;  %1749 = vmatmul.mubr.bf16.gmra.mrb[84].mxu1 %v1555_v20 }
 0x4d1   : > { %v3199_v24 = vpop.f32.mrb[43].mxu0  ;;  %1758 = vmatprep.mubr.bf16.mxu1 %v4159_v50 }
 0x4d2   : > { %v1520_v25 = vadd.f32 %v3197_v22, %v4682_v27  ;;  %v3200_v26 = vadd.f32 %v3199_v24, %v3198_v23 }
 0x4d4   : > { %1546 = vst [vmem:[%s4685_s28 + $0x60] sm:$0xff] %v1520_v25  ;;  %v1523_v28 = vadd.f32 %v3200_v26, %v4682_v27 }
 0x4d6   : > { %1547 = vst [vmem:[%s4685_s28 + $0x68] sm:$0xff] %v1523_v28  ;;  %v3201_v29 = vpop.f32.mrb[44].mxu0  ;;  %v1556_v30 = vpack.c.bf16 %v1523_v28, %v1520_v25 }
 0x4d7   : > { %v3202_v31 = vpop.f32.mrb[45].mxu0 }
 0x4d8   : > { %v3203_v32 = vadd.f32 %v3202_v31, %v3201_v29  ;;  %v3204_v33 = vpop.f32.mrb[46].mxu0  ;;  %1759 = vmatmul.mubr.bf16.gmra.mrb[88].mxu1 %v1556_v30 }
 0x4d9   : > { %v3205_v34 = vpop.f32.mrb[47].mxu0  ;;  %1768 = vmatprep.mubr.bf16.mxu1 %v4159_v50 }
 0x4da   : > { %v1528_v35 = vadd.f32 %v3203_v32, %v4682_v27  ;;  %v3206_v36 = vadd.f32 %v3205_v34, %v3204_v33 }
 0x4dc   : > { %1548 = vst [vmem:[%s4685_s28 + $0x70] sm:$0xff] %v1528_v35  ;;  %v1531_v37 = vadd.f32 %v3206_v36, %v4682_v27  ;;  %v3619_v27 = vld [vmem:[#allocation14 + $0x28] sm:$0xff]  }
 0x4dd   : > { %3329 = vmatprep.subr.bf16.mxu1 %v3619_v27 }
 0x4de   : > { %1549 = vst [vmem:[%s4685_s28 + $0x78] sm:$0xff] %v1531_v37  ;;  %v1557_v38 = vpack.c.bf16 %v1531_v37, %v1528_v35  ;;  %3330 = vmatpush3.bf16.msra.mxu1 %v3619_v27  ;;  %s4034_s28 = scalar_lea.vmem %s4033_s21, 4096 }
 0x4df   : > { %p4036_p8 = scmp.lt.s32.totalorder %s4034_s28, %s4028_s25 }
 0x4e0   : > { %1769 = vmatmul.mubr.bf16.gmra.mrb[92].mxu1 %v1557_v38 }
 0x4e1   : > { %p4037_p7 = por %p4036_p8, %p4035_p13 }
 0x4e3   : > { %p4038_p9 = pnand %p4037_p7, %p4031_p12 }
 0x57b   : > { %v1700_v49 = vpop.f32.mrb[64].mxu1 }
 0x57c   : > { %v1701_v51 = vadd.f32 %v1700_v49, %v4729_v47  ;;  %v1702_v40 = vpop.f32.mrb[65].mxu1 }
 0x57d   : > { %v1703_v52 = vadd.f32 %v1702_v40, %v4732_v48  ;;  %v1704_v53 = vpop.f32.mrb[66].mxu1 }
 0x57e   : > { %v1705_v54 = vadd.f32 %v1704_v53, %v4729_v47  ;;  %v1706_v55 = vpop.f32.mrb[67].mxu1  ;;  %v1779_v57 = vmax.f32 %v1701_v51, 0.0 }
 0x57f   : > { %v1707_v56 = vadd.f32 %v1706_v55, %v4732_v48  ;;  %v1780_v59 = vmax.f32 %v1703_v52, 0.0 }
 0x580   : > { %v1781_v58 = vmax.f32 %v1705_v54, 0.0 }
 0x581   : > { %v1782_v60 = vmax.f32 %v1707_v56, 0.0 }
 0x582   : > { %v1811_v61 = vpack.c.bf16 %v1781_v58, %v1779_v57 }
 0x583   : > { %v1812_v62 = vpack.c.bf16 %v1782_v60, %v1780_v59  ;;  %v1710_v63 = vpop.f32.mrb[68].mxu1 }
 0x584   : > { %v1711_v0 = vadd.f32 %v1710_v63, %v4729_v47  ;;  %v1712_v1 = vpop.f32.mrb[69].mxu1 }
 0x585   : > { %v1713_v2 = vadd.f32 %v1712_v1, %v4732_v48  ;;  %v1714_v3 = vpop.f32.mrb[70].mxu1  ;;  %1994 = vmatprep.mubr.bf16.mxu0 %v1812_v62 }
 0x586   : > { %v1715_v4 = vadd.f32 %v1714_v3, %v4729_v47  ;;  %v1716_v5 = vpop.f32.mrb[71].mxu1  ;;  %1995 = vmatmul.mubr.bf16.vlgmr.msra.gmra.mrb[48].mxu0 %v1811_v61  ;;  %v1783_v7 = vmax.f32 %v1711_v0, 0.0 }
 0x587   : > { %v1717_v6 = vadd.f32 %v1716_v5, %v4732_v48  ;;  %v1784_v9 = vmax.f32 %v1713_v2, 0.0 }
 0x588   : > { %v1785_v8 = vmax.f32 %v1715_v4, 0.0 }
 0x589   : > { %v1786_v11 = vmax.f32 %v1717_v6, 0.0 }
 0x58a   : > { %v1813_v12 = vpack.c.bf16 %v1785_v8, %v1783_v7 }
 0x58b   : > { %v1814_v16 = vpack.c.bf16 %v1786_v11, %v1784_v9  ;;  %v1720_v17 = vpop.f32.mrb[72].mxu1 }
 0x58c   : > { %v1721_v14 = vadd.f32 %v1720_v17, %v4729_v47  ;;  %v1722_v18 = vpop.f32.mrb[73].mxu1 }
 0x58d   : > { %v1723_v19 = vadd.f32 %v1722_v18, %v4732_v48  ;;  %v1724_v20 = vpop.f32.mrb[74].mxu1  ;;  %2002 = vmatprep.mubr.bf16.mxu0 %v1814_v16 }
 0x58e   : > { %v1725_v21 = vadd.f32 %v1724_v20, %v4729_v47  ;;  %v1726_v22 = vpop.f32.mrb[75].mxu1  ;;  %2003 = vmatmul.mubr.bf16.gmra.mrb[52].mxu0 %v1813_v12  ;;  %v1787_v24 = vmax.f32 %v1721_v14, 0.0 }
 0x58f   : > { %v1727_v23 = vadd.f32 %v1726_v22, %v4732_v48  ;;  %v1788_v26 = vmax.f32 %v1723_v19, 0.0 }
 0x590   : > { %v1789_v25 = vmax.f32 %v1725_v21, 0.0 }
 0x591   : > { %v1790_v28 = vmax.f32 %v1727_v23, 0.0 }
 0x592   : > { %v1815_v29 = vpack.c.bf16 %v1789_v25, %v1787_v24 }
 0x593   : > { %v1816_v30 = vpack.c.bf16 %v1790_v28, %v1788_v26  ;;  %v1730_v31 = vpop.f32.mrb[76].mxu1 }
 0x594   : > { %v1731_v32 = vadd.f32 %v1730_v31, %v4729_v47  ;;  %v1732_v33 = vpop.f32.mrb[77].mxu1 }
 0x595   : > { %v1733_v34 = vadd.f32 %v1732_v33, %v4732_v48  ;;  %v1734_v35 = vpop.f32.mrb[78].mxu1  ;;  %2010 = vmatprep.mubr.bf16.mxu0 %v1816_v30 }
 0x596   : > { %v1735_v36 = vadd.f32 %v1734_v35, %v4729_v47  ;;  %v1736_v37 = vpop.f32.mrb[79].mxu1  ;;  %2011 = vmatmul.mubr.bf16.gmra.mrb[56].mxu0 %v1815_v29  ;;  %v1791_v39 = vmax.f32 %v1731_v32, 0.0 }
 0x597   : > { %v1737_v38 = vadd.f32 %v1736_v37, %v4732_v48  ;;  %v1792_v42 = vmax.f32 %v1733_v34, 0.0 }
 0x598   : > { %v1793_v41 = vmax.f32 %v1735_v36, 0.0 }
 0x599   : > { %v1794_v43 = vmax.f32 %v1737_v38, 0.0 }
 0x59a   : > { %v1817_v44 = vpack.c.bf16 %v1793_v41, %v1791_v39 }
 0x59b   : > { %v1818_v45 = vpack.c.bf16 %v1794_v43, %v1792_v42  ;;  %v1740_v46 = vpop.f32.mrb[80].mxu1  ;;  %v3620_v43 = vld [vmem:[#allocation14 + $0x30] sm:$0xff]  }
 0x59c   : > { %v1741_v27 = vadd.f32 %v1740_v46, %v4729_v47  ;;  %v1742_v10 = vpop.f32.mrb[81].mxu1  ;;  %3331 = vmatprep.subr.bf16.mxu1 %v3620_v43  ;;  %v3627_v46 = vld [vmem:[#allocation16 + $0x14] ss:$8 sps:$4 sm:$0xff]  }
 0x59d   : > { %v1743_v49 = vadd.f32 %v1742_v10, %v4732_v48  ;;  %v1744_v51 = vpop.f32.mrb[82].mxu1  ;;  %2018 = vmatprep.mubr.bf16.mxu0 %v1818_v45  ;;  %3332 = vmatpush3.bf16.msra.mxu1 %v3620_v43  ;;  %v3624_v45 = vld [vmem:[#allocation16 + $0x4] ss:$8 sps:$4 sm:$0xff]   ;;  %v3628_v10 = vld [vmem:[#allocation16 + $0x20] ss:$8 sps:$4 sm:$0xff]  }
 0x59e   : > { %v1745_v40 = vadd.f32 %v1744_v51, %v4729_v47  ;;  %v1746_v52 = vpop.f32.mrb[83].mxu1  ;;  %2019 = vmatmul.mubr.bf16.gmra.mrb[60].mxu0 %v1817_v44  ;;  %v1795_v54 = vmax.f32 %v1741_v27, 0.0  ;;  %v3621_v44 = vld [vmem:[#allocation14 + $0x38] sm:$0xff]   ;;  %2383 = vmatprep.subr.bf16.mxu0 %v3624_v45  ;;  %v3630_v27 = vld [vmem:[#allocation16 + $0x24] ss:$8 sps:$4 sm:$0xff]  }
 0x59f   : > { %v1747_v53 = vadd.f32 %v1746_v52, %v4732_v48  ;;  %v1796_v56 = vmax.f32 %v1743_v49, 0.0  ;;  %3333 = vmatprep.subr.bf16.mxu1 %v3621_v44  ;;  %v3633_v49 = vld [vmem:[#allocation16 + $0x34] ss:$8 sps:$4 sm:$0xff]   ;;  %v3631_v51 = vld [vmem:[#allocation16 + $0x30] ss:$8 sps:$4 sm:$0xff]  }
 0x5a0   : > { %v1797_v55 = vmax.f32 %v1745_v40, 0.0  ;;  %v3636_v40 = vld [vmem:[#allocation16 + $0x44] ss:$8 sps:$4 sm:$0xff]   ;;  %v3634_v52 = vld [vmem:[#allocation16 + $0x40] ss:$8 sps:$4 sm:$0xff]  }
 0x5a1   : > { %v1798_v57 = vmax.f32 %v1747_v53, 0.0  ;;  %3334 = vmatpush3.bf16.msra.mxu1 %v3621_v44  ;;  %v3639_v53 = vld [vmem:[#allocation16 + $0x54] ss:$8 sps:$4 sm:$0xff]  }
 0x5a2   : > { %v1819_v58 = vpack.c.bf16 %v1797_v55, %v1795_v54  ;;  %v3637_v54 = vld [vmem:[#allocation16 + $0x50] ss:$8 sps:$4 sm:$0xff]   ;;  %v3642_v55 = vld [vmem:[#allocation16 + $0x64] ss:$8 sps:$4 sm:$0xff]  }
 0x5a3   : > { %v1820_v59 = vpack.c.bf16 %v1798_v57, %v1796_v56  ;;  %v1750_v60 = vpop.f32.mrb[84].mxu1  ;;  %v3640_v56 = vld [vmem:[#allocation16 + $0x60] ss:$8 sps:$4 sm:$0xff]  }
 0x5a4   : > { %v1751_v61 = vadd.f32 %v1750_v60, %v4729_v47  ;;  %v1752_v62 = vpop.f32.mrb[85].mxu1 }
 0x5a5   : > { %v1753_v63 = vadd.f32 %v1752_v62, %v4732_v48  ;;  %v1754_v0 = vpop.f32.mrb[86].mxu1  ;;  %2026 = vmatprep.mubr.bf16.mxu0 %v1820_v59 }
 0x5a6   : > { %v1755_v1 = vadd.f32 %v1754_v0, %v4729_v47  ;;  %v1756_v2 = vpop.f32.mrb[87].mxu1  ;;  %2027 = vmatmul.mubr.bf16.gmra.mrb[64].mxu0 %v1819_v58  ;;  %v1799_v4 = vmax.f32 %v1751_v61, 0.0  ;;  %v4770_v58 = vld [vmem:[%s5011_s22 + $0x7] ss:$0 sm:$0xff] }
 0x5a7   : > { %v1757_v3 = vadd.f32 %v1756_v2, %v4732_v48  ;;  %v1800_v6 = vmax.f32 %v1753_v63, 0.0 }
 0x5a8   : > { %v1801_v5 = vmax.f32 %v1755_v1, 0.0 }
 0x5a9   : > { %v1802_v7 = vmax.f32 %v1757_v3, 0.0 }
 0x5aa   : > { %v1821_v8 = vpack.c.bf16 %v1801_v5, %v1799_v4 }
 0x5ab   : > { %v1822_v9 = vpack.c.bf16 %v1802_v7, %v1800_v6  ;;  %v1760_v11 = vpop.f32.mrb[88].mxu1 }
 0x5ac   : > { %v1761_v12 = vadd.f32 %v1760_v11, %v4729_v47  ;;  %v1762_v16 = vpop.f32.mrb[89].mxu1 }
 0x5ad   : > { %v1763_v17 = vadd.f32 %v1762_v16, %v4732_v48  ;;  %v1764_v14 = vpop.f32.mrb[90].mxu1  ;;  %2034 = vmatprep.mubr.bf16.mxu0 %v1822_v9 }
 0x5ae   : > { %v1765_v18 = vadd.f32 %v1764_v14, %v4729_v47  ;;  %v1766_v19 = vpop.f32.mrb[91].mxu1  ;;  %2035 = vmatmul.mubr.bf16.gmra.mrb[68].mxu0 %v1821_v8  ;;  %v1803_v21 = vmax.f32 %v1761_v12, 0.0 }
 0x5af   : > { %v1767_v20 = vadd.f32 %v1766_v19, %v4732_v48  ;;  %v1804_v23 = vmax.f32 %v1763_v17, 0.0 }
 0x5b0   : > { %v1805_v22 = vmax.f32 %v1765_v18, 0.0 }
 0x5b1   : > { %v1806_v24 = vmax.f32 %v1767_v20, 0.0 }
 0x5b2   : > { %v1823_v25 = vpack.c.bf16 %v1805_v22, %v1803_v21 }
 0x5b3   : > { %v1824_v26 = vpack.c.bf16 %v1806_v24, %v1804_v23  ;;  %v1770_v28 = vpop.f32.mrb[92].mxu1 }
 0x5b4   : > { %v1771_v29 = vadd.f32 %v1770_v28, %v4729_v47  ;;  %v1772_v30 = vpop.f32.mrb[93].mxu1 }
 0x5b5   : > { %v1773_v31 = vadd.f32 %v1772_v30, %v4732_v48  ;;  %v1774_v32 = vpop.f32.mrb[94].mxu1  ;;  %2042 = vmatprep.mubr.bf16.mxu0 %v1824_v26 }
 0x5b6   : > { %v1775_v33 = vadd.f32 %v1774_v32, %v4729_v47  ;;  %v1776_v34 = vpop.f32.mrb[95].mxu1  ;;  %2043 = vmatmul.mubr.bf16.gmra.mrb[72].mxu0 %v1823_v25  ;;  %v1807_v36 = vmax.f32 %v1771_v29, 0.0  ;;  %v3622_v47 = vld [vmem:[#allocation16] ss:$8 sps:$4 sm:$0xff]  }
 0x5b7   : > { %v1777_v35 = vadd.f32 %v1776_v34, %v4732_v48  ;;  %v1808_v38 = vmax.f32 %v1773_v31, 0.0  ;;  %2384 = vmatpush1.bf16.msra.mxu0 %v3622_v47  ;;  %v3625_v48 = vld [vmem:[#allocation16 + $0x10] ss:$8 sps:$4 sm:$0xff]  }
 0x5b8   : > { %v1809_v37 = vmax.f32 %v1775_v33, 0.0  ;;  %2385 = vmatprep.subr.bf16.mxu0 %v3627_v46 }
 0x5b9   : > { %v1810_v39 = vmax.f32 %v1777_v35, 0.0 }
 0x5ba   : > { %v1825_v41 = vpack.c.bf16 %v1809_v37, %v1807_v36 }
 0x5bb   : > { %v1826_v42 = vpack.c.bf16 %v1810_v39, %v1808_v38  ;;  %2386 = vmatpush1.bf16.msra.mxu0 %v3625_v48 }
 0x5bc   : > { %2387 = vmatprep.subr.bf16.mxu0 %v3630_v27 }
 0x5bd   : > { %2050 = vmatprep.mubr.bf16.mxu0 %v1826_v42 }
 0x5be   : > { %2051 = vmatmul.mubr.bf16.gmra.mrb[76].mxu0 %v1825_v41 }
 0x5bf   : > { %2415 = vmatprep.mubr.bf16.mxu0 %v4159_v50  ;;  %2388 = vmatpush1.bf16.msra.mxu0 %v3628_v10 }
 0x5c0   : > { %2389 = vmatprep.subr.bf16.mxu0 %v3633_v49 }
 0x5c3   : > { %2390 = vmatpush1.bf16.msra.mxu0 %v3631_v51 }
 0x5c4   : > { %2391 = vmatprep.subr.bf16.mxu0 %v3636_v40 }
 0x5c7   : > { %2392 = vmatpush1.bf16.msra.mxu0 %v3634_v52 }
 0x5c8   : > { %2393 = vmatprep.subr.bf16.mxu0 %v3639_v53 }
 0x5cb   : > { %2394 = vmatpush1.bf16.msra.mxu0 %v3637_v54 }
 0x5cc   : > { %2395 = vmatprep.subr.bf16.mxu0 %v3642_v55 }
 0x5cf   : > { %2396 = vmatpush1.bf16.msra.mxu0 %v3640_v56 }
 0x659   : > { %v3223_v57 = vpop.f32.mrb[48].mxu0 }
 0x65a   : > { %v3224_v59 = vpop.f32.mrb[49].mxu0 }
 0x65b   : > { %v3225_v60 = vadd.f32 %v3224_v59, %v3223_v57  ;;  %v3226_v61 = vpop.f32.mrb[50].mxu0 }
 0x65c   : > { %v3227_v62 = vpop.f32.mrb[51].mxu0 }
 0x65d   : > { %v1997_v63 = vadd.f32 %v3225_v60, %v4770_v58  ;;  %v3228_v0 = vadd.f32 %v3227_v62, %v3226_v61 }
 0x65f   : > { %v2000_v1 = vadd.f32 %v3228_v0, %v4770_v58  ;;  %v2059_v2 = vmax.f32 %v1997_v63, 0.0 }
 0x661   : > { %v2060_v3 = vmax.f32 %v2000_v1, 0.0  ;;  %v3229_v4 = vpop.f32.mrb[52].mxu0 }
 0x662   : > { %v3230_v5 = vpop.f32.mrb[53].mxu0 }
 0x663   : > { %v3231_v6 = vadd.f32 %v3230_v5, %v3229_v4  ;;  %v3232_v7 = vpop.f32.mrb[54].mxu0  ;;  %v2075_v8 = vpack.c.bf16 %v2060_v3, %v2059_v2 }
 0x664   : > { %v3233_v9 = vpop.f32.mrb[55].mxu0 }
 0x665   : > { %v2005_v11 = vadd.f32 %v3231_v6, %v4770_v58  ;;  %v3234_v12 = vadd.f32 %v3233_v9, %v3232_v7  ;;  %3335 = vmatprep.mubr.bf16.mxu1 %v2075_v8 }
 0x667   : > { %v2008_v16 = vadd.f32 %v3234_v12, %v4770_v58  ;;  %v2061_v17 = vmax.f32 %v2005_v11, 0.0 }
 0x669   : > { %v2062_v14 = vmax.f32 %v2008_v16, 0.0  ;;  %v3235_v18 = vpop.f32.mrb[56].mxu0 }
 0x66a   : > { %v3236_v19 = vpop.f32.mrb[57].mxu0 }
 0x66b   : > { %v2076_v20 = vpack.c.bf16 %v2062_v14, %v2061_v17  ;;  %v3237_v21 = vadd.f32 %v3236_v19, %v3235_v18  ;;  %v3238_v22 = vpop.f32.mrb[58].mxu0 }
 0x66c   : > { %v3239_v23 = vpop.f32.mrb[59].mxu0 }
 0x66d   : > { %v2013_v24 = vadd.f32 %v3237_v21, %v4770_v58  ;;  %v3240_v25 = vadd.f32 %v3239_v23, %v3238_v22  ;;  %3336 = vmatmul.mubr.bf16.vlgmr.msra.gmra.mrb[96].mxu1 %v2076_v20 }
 0x66f   : > { %v2016_v26 = vadd.f32 %v3240_v25, %v4770_v58  ;;  %v2063_v28 = vmax.f32 %v2013_v24, 0.0  ;;  %v3643_v25 = vld [vmem:[#allocation16 + $0x70] ss:$8 sps:$4 sm:$0xff]  }
 0x671   : > { %v2064_v29 = vmax.f32 %v2016_v26, 0.0  ;;  %v3241_v30 = vpop.f32.mrb[60].mxu0  ;;  %v3645_v26 = vld [vmem:[#allocation16 + $0x74] ss:$8 sps:$4 sm:$0xff]  }
 0x672   : > { %v3242_v31 = vpop.f32.mrb[61].mxu0  ;;  %2397 = vmatprep.subr.bf16.mxu0 %v3645_v26 }
 0x673   : > { %v3243_v32 = vadd.f32 %v3242_v31, %v3241_v30  ;;  %v3244_v33 = vpop.f32.mrb[62].mxu0  ;;  %v2077_v34 = vpack.c.bf16 %v2064_v29, %v2063_v28  ;;  %2398 = vmatpush1.bf16.msra.mxu0 %v3643_v25  ;;  %v3024_v28 = vld [vmem:[%s5011_s22 + $0x8] ss:$0 sm:$0xff] }
 0x674   : > { %v3245_v35 = vpop.f32.mrb[63].mxu0 }
 0x675   : > { %v2021_v36 = vadd.f32 %v3243_v32, %v4770_v58  ;;  %v3246_v37 = vadd.f32 %v3245_v35, %v3244_v33  ;;  %3339 = vmatprep.mubr.bf16.mxu1 %v2077_v34 }
 0x677   : > { %v2024_v38 = vadd.f32 %v3246_v37, %v4770_v58  ;;  %v2065_v39 = vmax.f32 %v2021_v36, 0.0 }
 0x679   : > { %v2066_v41 = vmax.f32 %v2024_v38, 0.0  ;;  %v3247_v42 = vpop.f32.mrb[64].mxu0 }
 0x67a   : > { %v3248_v43 = vpop.f32.mrb[65].mxu0 }
 0x67b   : > { %v3249_v44 = vadd.f32 %v3248_v43, %v3247_v42  ;;  %v3250_v47 = vpop.f32.mrb[66].mxu0  ;;  %v2078_v45 = vpack.c.bf16 %v2066_v41, %v2065_v39 }
 0x67c   : > { %v3251_v46 = vpop.f32.mrb[67].mxu0 }
 0x67d   : > { %v2029_v48 = vadd.f32 %v3249_v44, %v4770_v58  ;;  %v3252_v27 = vadd.f32 %v3251_v46, %v3250_v47  ;;  %3340 = vmatmul.mubr.bf16.gmra.mrb[100].mxu1 %v2078_v45 }
 0x67f   : > { %v2032_v10 = vadd.f32 %v3252_v27, %v4770_v58  ;;  %v2067_v49 = vmax.f32 %v2029_v48, 0.0 }
 0x681   : > { %v2068_v51 = vmax.f32 %v2032_v10, 0.0  ;;  %v3253_v40 = vpop.f32.mrb[68].mxu0 }
 0x682   : > { %v3254_v52 = vpop.f32.mrb[69].mxu0 }
 0x683   : > { %v3255_v53 = vadd.f32 %v3254_v52, %v3253_v40  ;;  %v3256_v54 = vpop.f32.mrb[70].mxu0  ;;  %v2079_v55 = vpack.c.bf16 %v2068_v51, %v2067_v49 }
 0x684   : > { %v3257_v56 = vpop.f32.mrb[71].mxu0 }
 0x685   : > { %v2037_v57 = vadd.f32 %v3255_v53, %v4770_v58  ;;  %v3258_v59 = vadd.f32 %v3257_v56, %v3256_v54  ;;  %3343 = vmatprep.mubr.bf16.mxu1 %v2079_v55 }
 0x687   : > { %v2040_v60 = vadd.f32 %v3258_v59, %v4770_v58  ;;  %v2069_v61 = vmax.f32 %v2037_v57, 0.0 }
 0x689   : > { %v2070_v62 = vmax.f32 %v2040_v60, 0.0  ;;  %v3259_v63 = vpop.f32.mrb[72].mxu0 }
 0x68a   : > { %v3260_v0 = vpop.f32.mrb[73].mxu0 }
 0x68b   : > { %v3261_v1 = vadd.f32 %v3260_v0, %v3259_v63  ;;  %v3262_v2 = vpop.f32.mrb[74].mxu0  ;;  %v2080_v3 = vpack.c.bf16 %v2070_v62, %v2069_v61 }
 0x68c   : > { %v3263_v4 = vpop.f32.mrb[75].mxu0 }
 0x68d   : > { %v2045_v5 = vadd.f32 %v3261_v1, %v4770_v58  ;;  %v3264_v6 = vadd.f32 %v3263_v4, %v3262_v2  ;;  %3344 = vmatmul.mubr.bf16.gmra.mrb[104].mxu1 %v2080_v3 }
 0x68f   : > { %v2048_v7 = vadd.f32 %v3264_v6, %v4770_v58  ;;  %v2071_v8 = vmax.f32 %v2045_v5, 0.0 }
 0x691   : > { %v2072_v9 = vmax.f32 %v2048_v7, 0.0  ;;  %v3265_v11 = vpop.f32.mrb[76].mxu0 }
 0x692   : > { %v3266_v12 = vpop.f32.mrb[77].mxu0 }
 0x693   : > { %v3267_v16 = vadd.f32 %v3266_v12, %v3265_v11  ;;  %v3268_v17 = vpop.f32.mrb[78].mxu0  ;;  %v2081_v14 = vpack.c.bf16 %v2072_v9, %v2071_v8 }
 0x694   : > { %v3269_v18 = vpop.f32.mrb[79].mxu0 }
 0x695   : > { %v2053_v19 = vadd.f32 %v3267_v16, %v4770_v58  ;;  %v3270_v20 = vadd.f32 %v3269_v18, %v3268_v17  ;;  %3347 = vmatprep.mubr.bf16.mxu1 %v2081_v14 }
 0x697   : > { %v2056_v21 = vadd.f32 %v3270_v20, %v4770_v58  ;;  %v2073_v22 = vmax.f32 %v2053_v19, 0.0 }
 0x699   : > { %v2074_v23 = vmax.f32 %v2056_v21, 0.0 }
 0x69b   : > { %v2082_v24 = vpack.c.bf16 %v2074_v23, %v2073_v22 }
 0x69d   : > { %3348 = vmatmul.mubr.bf16.gmra.mrb[108].mxu1 %v2082_v24 }
 0x740   : > { %v3337_v29 = vpop.f32.mrb[96].mxu1 }
 0x741   : > { %v2197_v30 = vadd.f32 %v3337_v29, %v3024_v28  ;;  %v2188_v31 = vpop.f32.mrb[97].mxu1 }
 0x742   : > { %v2189_v32 = vadd.f32 %v3024_v28, %v2188_v31  ;;  %v3338_v33 = vpop.f32.mrb[98].mxu1 }
 0x743   : > { %v2200_v34 = vadd.f32 %v3338_v33, %v3024_v28  ;;  %v2191_v35 = vpop.f32.mrb[99].mxu1  ;;  %v2253_v36 = vmax.f32 %v2197_v30, 0.0 }
 0x744   : > { %v2192_v58 = vadd.f32 %v3024_v28, %v2191_v35  ;;  %v2251_v38 = vmax.f32 %v2189_v32, 0.0 }
 0x745   : > { %v2254_v37 = vmax.f32 %v2200_v34, 0.0 }
 0x746   : > { %v2252_v39 = vmax.f32 %v2192_v58, 0.0 }
 0x747   : > { %v2268_v41 = vpack.c.bf16 %v2254_v37, %v2253_v36 }
 0x748   : > { %v2267_v42 = vpack.c.bf16 %v2252_v39, %v2251_v38 }
 0x74a   : > { %2416 = vmatmul.mubr.bf16.vlgmr.msra.gmra.mrb[80].mxu0 %v2267_v42 }
 0x74b   : > { %2425 = vmatprep.mubr.bf16.mxu0 %v4159_v50 }
 0x750   : > { %v3341_v43 = vpop.f32.mrb[100].mxu1 }
 0x751   : > { %v2213_v44 = vadd.f32 %v3341_v43, %v3024_v28  ;;  %v2204_v47 = vpop.f32.mrb[101].mxu1 }
 0x752   : > { %v2205_v45 = vadd.f32 %v3024_v28, %v2204_v47  ;;  %v3342_v46 = vpop.f32.mrb[102].mxu1  ;;  %2426 = vmatmul.mubr.bf16.gmra.mrb[84].mxu0 %v2268_v41 }
 0x753   : > { %v2216_v48 = vadd.f32 %v3342_v46, %v3024_v28  ;;  %v2207_v27 = vpop.f32.mrb[103].mxu1  ;;  %2435 = vmatprep.mubr.bf16.mxu0 %v4159_v50  ;;  %v2257_v49 = vmax.f32 %v2213_v44, 0.0 }
 0x754   : > { %v2208_v10 = vadd.f32 %v3024_v28, %v2207_v27  ;;  %v2255_v40 = vmax.f32 %v2205_v45, 0.0 }
 0x755   : > { %v2258_v51 = vmax.f32 %v2216_v48, 0.0 }
 0x756   : > { %v2256_v52 = vmax.f32 %v2208_v10, 0.0 }
 0x757   : > { %v2270_v53 = vpack.c.bf16 %v2258_v51, %v2257_v49 }
 0x758   : > { %v2269_v54 = vpack.c.bf16 %v2256_v52, %v2255_v40 }
 0x75a   : > { %2436 = vmatmul.mubr.bf16.gmra.mrb[88].mxu0 %v2269_v54 }
 0x75b   : > { %2445 = vmatprep.mubr.bf16.mxu0 %v4159_v50 }
 0x760   : > { %v3345_v55 = vpop.f32.mrb[104].mxu1 }
 0x761   : > { %v2229_v56 = vadd.f32 %v3345_v55, %v3024_v28  ;;  %v2220_v57 = vpop.f32.mrb[105].mxu1 }
 0x762   : > { %v2221_v59 = vadd.f32 %v3024_v28, %v2220_v57  ;;  %v3346_v60 = vpop.f32.mrb[106].mxu1  ;;  %2446 = vmatmul.mubr.bf16.gmra.mrb[92].mxu0 %v2270_v53 }
 0x763   : > { %v2232_v61 = vadd.f32 %v3346_v60, %v3024_v28  ;;  %v2223_v62 = vpop.f32.mrb[107].mxu1  ;;  %2455 = vmatprep.mubr.bf16.mxu0 %v4159_v50  ;;  %v2261_v0 = vmax.f32 %v2229_v56, 0.0 }
 0x764   : > { %v2224_v63 = vadd.f32 %v3024_v28, %v2223_v62  ;;  %v2259_v2 = vmax.f32 %v2221_v59, 0.0 }
 0x765   : > { %v2262_v1 = vmax.f32 %v2232_v61, 0.0 }
 0x766   : > { %v2260_v3 = vmax.f32 %v2224_v63, 0.0 }
 0x767   : > { %v2272_v4 = vpack.c.bf16 %v2262_v1, %v2261_v0 }
 0x768   : > { %v2271_v5 = vpack.c.bf16 %v2260_v3, %v2259_v2 }
 0x76a   : > { %2456 = vmatmul.mubr.bf16.gmra.mrb[96].mxu0 %v2271_v5 }
 0x76b   : > { %2465 = vmatprep.mubr.bf16.mxu0 %v4159_v50 }
 0x770   : > { %v3349_v6 = vpop.f32.mrb[108].mxu1 }
 0x771   : > { %v2245_v7 = vadd.f32 %v3349_v6, %v3024_v28  ;;  %v2236_v8 = vpop.f32.mrb[109].mxu1 }
 0x772   : > { %v2237_v9 = vadd.f32 %v3024_v28, %v2236_v8  ;;  %v3350_v11 = vpop.f32.mrb[110].mxu1  ;;  %2466 = vmatmul.mubr.bf16.gmra.mrb[100].mxu0 %v2272_v4 }
 0x773   : > { %v2248_v12 = vadd.f32 %v3350_v11, %v3024_v28  ;;  %v2239_v16 = vpop.f32.mrb[111].mxu1  ;;  %2475 = vmatprep.mubr.bf16.mxu0 %v4159_v50  ;;  %v2265_v14 = vmax.f32 %v2245_v7, 0.0 }
 0x774   : > { %v2240_v17 = vadd.f32 %v3024_v28, %v2239_v16  ;;  %v2263_v19 = vmax.f32 %v2237_v9, 0.0 }
 0x775   : > { %v2266_v18 = vmax.f32 %v2248_v12, 0.0 }
 0x776   : > { %v2264_v20 = vmax.f32 %v2240_v17, 0.0 }
 0x777   : > { %v2274_v21 = vpack.c.bf16 %v2266_v18, %v2265_v14 }
 0x778   : > { %v2273_v22 = vpack.c.bf16 %v2264_v20, %v2263_v19 }
 0x77a   : > { %2476 = vmatmul.mubr.bf16.gmra.mrb[104].mxu0 %v2273_v22 }
 0x77b   : > { %2485 = vmatprep.mubr.bf16.mxu0 %v4159_v50 }
 0x782   : > { %2486 = vmatmul.mubr.bf16.gmra.mrb[108].mxu0 %v2274_v21 }
 0x783   : > { %4041 = shalt.err (!%p4038_p9)
}
 0x784   : > { %s4042_s29 = scalar_lea.hbm %s4803_s24, 2048  ;;  %s4046_s27 = scalar_lea.hbm %s5012_s14, 4096 }
 0x785   : > { %p4043_p4 = scmp.ne.s32.totalorder %s4803_s24, %s4042_s29  ;;  %p4047_p2 = scmp.lt.u32.totalorder %s4803_s24, %s5012_s14 }
 0x786   : > { %p4048_p6 = scmp.lt.u32.totalorder %s4046_s27, %s4042_s29  ;;  %p4050_p10 = scmp.lt.u32.totalorder %s4042_s29, %s4803_s24 }
 0x787   : > { %p4044_p3 = pnand %p4043_p4, %p5013_p1 }
 0x788   : > { %p4049_p5 = por %p4048_p6, %p4047_p2 }
 0x789   : > { %p4045_p0 = pneg %p4044_p3 }
 0x78a   : > { %p4051_p11 = por %p4050_p10, %p4049_p5 }
 0x78c   : > { %p4052_p12 = pnand %p4051_p11, %p4045_p0 }
 0x78e   : > { %4055 = shalt.err (!%p4052_p12)
}
 0x78f   : > { %s4161_s25 = smov 128   ;;  %s4162_s28 = smov 8   ;;  %v2291_v50 = vld [vmem:[%s5011_s22 + $0x9] sm:$0x3] }
 0x790   : > { %3401 = dma.vmem_to_hbm [thread:$0]  (%p5013_p1), %s4805_s1, 2048, %s4803_s24, %s2689_s9, %s4161_s25, %s4161_s25, %s4162_s28   ;;  %v4835_v23 = vrot.slane %v2291_v50, %v4633_v13  ;;  %v4838_v24 = vrot.slane %v2291_v50, %v4638_v15 }
 0x791   : > { %s5014_s30 = sshll.u32 %s4537_s12, 8  ;;  %s3062_s24 = sshll.u32 %s4247_s23, 12 }
 0x792   : > { %s4858_s1 = scalar_lea.vmem [#allocation18], %s5014_s30  ;;  %s5015_s21 = sld [smem:[#allocation30_spill]] }
 0x793   : > { %s2724_s9 = sshll.u32 %s4858_s1, 4  ;;  %s2694_s23 = scalar_lea.sflag [#allocation19], %s4537_s12  ;;  %s4912_s9 = int_to_ptr.vmem [resolvable:$true] %s2724_s9 }
 0x794   : > { %s4056_s28 = scalar_lea.vmem %s4912_s9, 4096  ;;  %s4163_s11 = smov [#allocation18]  }
 0x795   : > { %p4057_p13 = scmp.ne.s32.totalorder %s4912_s9, %s4056_s28  ;;  %s4060_s15 = sshll.u32 %s4163_s11, 4  ;;  %s4061_s15 = int_to_ptr.vmem [resolvable:$false] %s4060_s15 }
 0x796   : > { %s4062_s30 = scalar_lea.vmem %s4061_s15, 8192  ;;  %p4063_p9 = scmp.lt.s32.totalorder %s4912_s9, %s4061_s15 }
 0x797   : > { %p4058_p8 = pnand %p4057_p13, %p5013_p1  ;;  %p4064_p4 = scmp.lt.s32.totalorder %s4062_s30, %s4056_s28 }
 0x798   : > { %s4910_s25 = scalar_lea.hbm %s5015_s21, %s3062_s24 }
 0x799   : > { %p4059_p7 = pneg %p4058_p8  ;;  %p4065_p3 = por %p4064_p4, %p4063_p9 }
 0x79b   : > { %p4066_p0 = pnand %p4065_p3, %p4059_p7 }
 0x81d   : > { %v2417_v25 = vpop.f32.mrb[80].mxu0 }
 0x81e   : > { %v2418_v26 = vadd.f32 %v2417_v25, %v4835_v23  ;;  %v2419_v28 = vpop.f32.mrb[81].mxu0 }
 0x81f   : > { %v2420_v29 = vadd.f32 %v2419_v28, %v4838_v24  ;;  %v2421_v30 = vpop.f32.mrb[82].mxu0 }
 0x820   : > { %v2496_v31 = vsub.f32 0.0, %v2418_v26  ;;  %v2422_v32 = vadd.f32 %v2421_v30, %v4835_v23  ;;  %v2423_v33 = vpop.f32.mrb[83].mxu0 }
 0x821   : > { %v2497_v34 = vsub.f32 0.0, %v2420_v29  ;;  %v2424_v35 = vadd.f32 %v2423_v33, %v4838_v24 }
 0x822   : > { %v2528_v58 = vmul.f32 1.442695, %v2496_v31  ;;  %v2498_v13 = vsub.f32 0.0, %v2422_v32 }
 0x823   : > { %v2530_v36 = vmul.f32 1.442695, %v2497_v34  ;;  %v2499_v37 = vsub.f32 0.0, %v2424_v35 }
 0x824   : > { %3646 = vpow2.f32 %v2528_v58  ;;  %v2532_v15 = vmul.f32 1.442695, %v2498_v13 }
 0x825   : > { %3648 = vpow2.f32 %v2530_v36  ;;  %v2534_v38 = vmul.f32 1.442695, %v2499_v37  ;;  %v2427_v39 = vpop.f32.mrb[84].mxu0 }
 0x826   : > { %3650 = vpow2.f32 %v2532_v15  ;;  %v2428_v41 = vadd.f32 %v2427_v39, %v4835_v23  ;;  %v2429_v42 = vpop.f32.mrb[85].mxu0 }
 0x827   : > { %3652 = vpow2.f32 %v2534_v38  ;;  %v2430_v43 = vadd.f32 %v2429_v42, %v4838_v24  ;;  %v2431_v44 = vpop.f32.mrb[86].mxu0 }
 0x828   : > { %v2500_v47 = vsub.f32 0.0, %v2428_v41  ;;  %v2432_v45 = vadd.f32 %v2431_v44, %v4835_v23  ;;  %v2433_v46 = vpop.f32.mrb[87].mxu0 }
 0x829   : > { %v2501_v48 = vsub.f32 0.0, %v2430_v43  ;;  %v2434_v27 = vadd.f32 %v2433_v46, %v4838_v24 }
 0x82a   : > { %v2536_v10 = vmul.f32 1.442695, %v2500_v47  ;;  %v2502_v49 = vsub.f32 0.0, %v2432_v45 }
 0x82b   : > { %v2538_v51 = vmul.f32 1.442695, %v2501_v48  ;;  %v2503_v40 = vsub.f32 0.0, %v2434_v27 }
 0x82c   : > { %3654 = vpow2.f32 %v2536_v10  ;;  %v2540_v52 = vmul.f32 1.442695, %v2502_v49 }
 0x82d   : > { %3656 = vpow2.f32 %v2538_v51  ;;  %v2542_v53 = vmul.f32 1.442695, %v2503_v40  ;;  %v2437_v54 = vpop.f32.mrb[88].mxu0 }
 0x82e   : > { %v3647_v55 = vpop.eup %3646  ;;  %3658 = vpow2.f32 %v2540_v52  ;;  %v2438_v56 = vadd.f32 %v2437_v54, %v4835_v23  ;;  %v2439_v57 = vpop.f32.mrb[89].mxu0 }
 0x82f   : > { %v3649_v59 = vpop.eup %3648  ;;  %v2592_v60 = vadd.f32 1.0, %v3647_v55  ;;  %3660 = vpow2.f32 %v2542_v53  ;;  %v2440_v61 = vadd.f32 %v2439_v57, %v4838_v24  ;;  %v2441_v62 = vpop.f32.mrb[90].mxu0 }
 0x830   : > { %v3651_v63 = vpop.eup %3650  ;;  %v2593_v0 = vadd.f32 1.0, %v3649_v59  ;;  %v2504_v1 = vsub.f32 0.0, %v2438_v56  ;;  %v2442_v2 = vadd.f32 %v2441_v62, %v4835_v23  ;;  %v2443_v3 = vpop.f32.mrb[91].mxu0 }
 0x831   : > { %v3653_v4 = vpop.eup %3652  ;;  %3662 = vrcp.f32 %v2592_v60  ;;  %v2594_v5 = vadd.f32 1.0, %v3651_v63  ;;  %v2505_v6 = vsub.f32 0.0, %v2440_v61  ;;  %v2444_v7 = vadd.f32 %v2443_v3, %v4838_v24 }
 0x832   : > { %3664 = vrcp.f32 %v2593_v0  ;;  %v2595_v8 = vadd.f32 1.0, %v3653_v4  ;;  %v2544_v9 = vmul.f32 1.442695, %v2504_v1  ;;  %v2506_v11 = vsub.f32 0.0, %v2442_v2 }
 0x833   : > { %3666 = vrcp.f32 %v2594_v5  ;;  %v2546_v12 = vmul.f32 1.442695, %v2505_v6  ;;  %v2507_v16 = vsub.f32 0.0, %v2444_v7 }
 0x834   : > { %3668 = vrcp.f32 %v2595_v8  ;;  %v2548_v17 = vmul.f32 1.442695, %v2506_v11 }
 0x835   : > { %3670 = vpow2.f32 %v2544_v9  ;;  %v2550_v14 = vmul.f32 1.442695, %v2507_v16  ;;  %v2447_v18 = vpop.f32.mrb[92].mxu0 }
 0x836   : > { %v3655_v19 = vpop.eup %3654  ;;  %3672 = vpow2.f32 %v2546_v12  ;;  %v2448_v20 = vadd.f32 %v2447_v18, %v4835_v23  ;;  %v2449_v21 = vpop.f32.mrb[93].mxu0 }
 0x837   : > { %v3657_v22 = vpop.eup %3656  ;;  %v2596_v50 = vadd.f32 1.0, %v3655_v19  ;;  %3674 = vpow2.f32 %v2548_v17  ;;  %v2450_v25 = vadd.f32 %v2449_v21, %v4838_v24  ;;  %v2451_v26 = vpop.f32.mrb[94].mxu0 }
 0x838   : > { %v3659_v28 = vpop.eup %3658  ;;  %v2597_v29 = vadd.f32 1.0, %v3657_v22  ;;  %3676 = vpow2.f32 %v2550_v14  ;;  %v2508_v30 = vsub.f32 0.0, %v2448_v20  ;;  %v2452_v31 = vadd.f32 %v2451_v26, %v4835_v23  ;;  %v2453_v32 = vpop.f32.mrb[95].mxu0 }
 0x839   : > { %v3661_v33 = vpop.eup %3660  ;;  %3678 = vrcp.f32 %v2596_v50  ;;  %v2598_v34 = vadd.f32 1.0, %v3659_v28  ;;  %v2509_v35 = vsub.f32 0.0, %v2450_v25  ;;  %v2454_v58 = vadd.f32 %v2453_v32, %v4838_v24 }
 0x83a   : > { %3680 = vrcp.f32 %v2597_v29  ;;  %v2599_v13 = vadd.f32 1.0, %v3661_v33  ;;  %v2552_v36 = vmul.f32 1.442695, %v2508_v30  ;;  %v2510_v37 = vsub.f32 0.0, %v2452_v31 }
 0x83b   : > { %v3663_v15 = vpop.eup %3662  ;;  %3682 = vrcp.f32 %v2598_v34  ;;  %v2554_v38 = vmul.f32 1.442695, %v2509_v35  ;;  %v2511_v39 = vsub.f32 0.0, %v2454_v58 }
 0x83c   : > { %v3665_v41 = vpop.eup %3664  ;;  %2656 = vst [vmem:[%s4858_s1] sm:$0xff] %v3663_v15  ;;  %3684 = vrcp.f32 %v2599_v13  ;;  %v2556_v42 = vmul.f32 1.442695, %v2510_v37 }
 0x83d   : > { %v3667_v43 = vpop.eup %3666  ;;  %2657 = vst [vmem:[%s4858_s1 + $0x8] sm:$0xff] %v3665_v41  ;;  %3686 = vpow2.f32 %v2552_v36  ;;  %v2558_v44 = vmul.f32 1.442695, %v2511_v39  ;;  %v2457_v47 = vpop.f32.mrb[96].mxu0 }
 0x83e   : > { %v3669_v45 = vpop.eup %3668  ;;  %2658 = vst [vmem:[%s4858_s1 + $0x10] sm:$0xff] %v3667_v43  ;;  %3688 = vpow2.f32 %v2554_v38  ;;  %v2458_v46 = vadd.f32 %v2457_v47, %v4835_v23  ;;  %v2459_v48 = vpop.f32.mrb[97].mxu0 }
 0x83f   : > { %v3671_v27 = vpop.eup %3670  ;;  %2659 = vst [vmem:[%s4858_s1 + $0x18] sm:$0xff] %v3669_v45  ;;  %3690 = vpow2.f32 %v2556_v42  ;;  %v2460_v10 = vadd.f32 %v2459_v48, %v4838_v24  ;;  %v2461_v49 = vpop.f32.mrb[98].mxu0 }
 0x840   : > { %v3673_v51 = vpop.eup %3672  ;;  %v2600_v40 = vadd.f32 1.0, %v3671_v27  ;;  %3692 = vpow2.f32 %v2558_v44  ;;  %v2512_v52 = vsub.f32 0.0, %v2458_v46  ;;  %v2462_v53 = vadd.f32 %v2461_v49, %v4835_v23  ;;  %v2463_v54 = vpop.f32.mrb[99].mxu0 }
 0x841   : > { %v3675_v55 = vpop.eup %3674  ;;  %v2601_v56 = vadd.f32 1.0, %v3673_v51  ;;  %v2513_v57 = vsub.f32 0.0, %v2460_v10  ;;  %v2464_v59 = vadd.f32 %v2463_v54, %v4838_v24 }
 0x842   : > { %v3677_v60 = vpop.eup %3676  ;;  %3694 = vrcp.f32 %v2600_v40  ;;  %v2602_v61 = vadd.f32 1.0, %v3675_v55  ;;  %v2560_v62 = vmul.f32 1.442695, %v2512_v52  ;;  %v2514_v63 = vsub.f32 0.0, %v2462_v53 }
 0x843   : > { %v3679_v0 = vpop.eup %3678  ;;  %3696 = vrcp.f32 %v2601_v56  ;;  %v2603_v1 = vadd.f32 1.0, %v3677_v60  ;;  %v2562_v2 = vmul.f32 1.442695, %v2513_v57  ;;  %v2515_v3 = vsub.f32 0.0, %v2464_v59 }
 0x844   : > { %v3681_v4 = vpop.eup %3680  ;;  %2660 = vst [vmem:[%s4858_s1 + $0x20] sm:$0xff] %v3679_v0  ;;  %3698 = vrcp.f32 %v2602_v61  ;;  %v2564_v5 = vmul.f32 1.442695, %v2514_v63 }
 0x845   : > { %v3683_v6 = vpop.eup %3682  ;;  %2661 = vst [vmem:[%s4858_s1 + $0x28] sm:$0xff] %v3681_v4  ;;  %3700 = vrcp.f32 %v2603_v1  ;;  %v2566_v7 = vmul.f32 1.442695, %v2515_v3  ;;  %v2467_v8 = vpop.f32.mrb[100].mxu0 }
 0x846   : > { %v3685_v9 = vpop.eup %3684  ;;  %2662 = vst [vmem:[%s4858_s1 + $0x30] sm:$0xff] %v3683_v6  ;;  %3702 = vpow2.f32 %v2560_v62  ;;  %v2468_v11 = vadd.f32 %v2467_v8, %v4835_v23  ;;  %v2469_v12 = vpop.f32.mrb[101].mxu0 }
 0x847   : > { %v3687_v16 = vpop.eup %3686  ;;  %2663 = vst [vmem:[%s4858_s1 + $0x38] sm:$0xff] %v3685_v9  ;;  %3704 = vpow2.f32 %v2562_v2  ;;  %v2470_v17 = vadd.f32 %v2469_v12, %v4838_v24  ;;  %v2471_v14 = vpop.f32.mrb[102].mxu0 }
 0x848   : > { %v3689_v18 = vpop.eup %3688  ;;  %v2604_v19 = vadd.f32 1.0, %v3687_v16  ;;  %3706 = vpow2.f32 %v2564_v5  ;;  %v2516_v20 = vsub.f32 0.0, %v2468_v11  ;;  %v2472_v21 = vadd.f32 %v2471_v14, %v4835_v23  ;;  %v2473_v22 = vpop.f32.mrb[103].mxu0 }
 0x849   : > { %v3691_v50 = vpop.eup %3690  ;;  %v2605_v25 = vadd.f32 1.0, %v3689_v18  ;;  %3708 = vpow2.f32 %v2566_v7  ;;  %v2517_v26 = vsub.f32 0.0, %v2470_v17  ;;  %v2474_v28 = vadd.f32 %v2473_v22, %v4838_v24 }
 0x84a   : > { %v3693_v29 = vpop.eup %3692  ;;  %3710 = vrcp.f32 %v2604_v19  ;;  %v2606_v30 = vadd.f32 1.0, %v3691_v50  ;;  %v2568_v31 = vmul.f32 1.442695, %v2516_v20  ;;  %v2518_v32 = vsub.f32 0.0, %v2472_v21 }
 0x84b   : > { %3712 = vrcp.f32 %v2605_v25  ;;  %v2607_v33 = vadd.f32 1.0, %v3693_v29  ;;  %v2570_v34 = vmul.f32 1.442695, %v2517_v26  ;;  %v2519_v35 = vsub.f32 0.0, %v2474_v28 }
 0x84c   : > { %v3695_v58 = vpop.eup %3694  ;;  %3714 = vrcp.f32 %v2606_v30  ;;  %v2572_v13 = vmul.f32 1.442695, %v2518_v32 }
 0x84d   : > { %v3697_v36 = vpop.eup %3696  ;;  %2664 = vst [vmem:[%s4858_s1 + $0x40] sm:$0xff] %v3695_v58  ;;  %3716 = vrcp.f32 %v2607_v33  ;;  %v2574_v37 = vmul.f32 1.442695, %v2519_v35  ;;  %v2477_v15 = vpop.f32.mrb[104].mxu0 }
 0x84e   : > { %v3699_v38 = vpop.eup %3698  ;;  %2665 = vst [vmem:[%s4858_s1 + $0x48] sm:$0xff] %v3697_v36  ;;  %3718 = vpow2.f32 %v2568_v31  ;;  %v2478_v39 = vadd.f32 %v2477_v15, %v4835_v23  ;;  %v2479_v41 = vpop.f32.mrb[105].mxu0 }
 0x84f   : > { %v3701_v42 = vpop.eup %3700  ;;  %2666 = vst [vmem:[%s4858_s1 + $0x50] sm:$0xff] %v3699_v38  ;;  %3720 = vpow2.f32 %v2570_v34  ;;  %v2480_v43 = vadd.f32 %v2479_v41, %v4838_v24  ;;  %v2481_v44 = vpop.f32.mrb[106].mxu0 }
 0x850   : > { %v3703_v47 = vpop.eup %3702  ;;  %2667 = vst [vmem:[%s4858_s1 + $0x58] sm:$0xff] %v3701_v42  ;;  %3722 = vpow2.f32 %v2572_v13  ;;  %v2520_v45 = vsub.f32 0.0, %v2478_v39  ;;  %v2482_v46 = vadd.f32 %v2481_v44, %v4835_v23  ;;  %v2483_v48 = vpop.f32.mrb[107].mxu0 }
 0x851   : > { %v3705_v27 = vpop.eup %3704  ;;  %v2608_v10 = vadd.f32 1.0, %v3703_v47  ;;  %3724 = vpow2.f32 %v2574_v37  ;;  %v2521_v49 = vsub.f32 0.0, %v2480_v43  ;;  %v2484_v51 = vadd.f32 %v2483_v48, %v4838_v24 }
 0x852   : > { %v3707_v40 = vpop.eup %3706  ;;  %v2609_v52 = vadd.f32 1.0, %v3705_v27  ;;  %v2522_v53 = vsub.f32 0.0, %v2482_v46  ;;  %v2576_v56 = vmul.f32 1.442695, %v2520_v45 }
 0x853   : > { %v3709_v54 = vpop.eup %3708  ;;  %3726 = vrcp.f32 %v2608_v10  ;;  %v2610_v55 = vadd.f32 1.0, %v3707_v40  ;;  %v2523_v57 = vsub.f32 0.0, %v2484_v51  ;;  %v2578_v61 = vmul.f32 1.442695, %v2521_v49 }
 0x854   : > { %v3711_v59 = vpop.eup %3710  ;;  %3728 = vrcp.f32 %v2609_v52  ;;  %v2611_v60 = vadd.f32 1.0, %v3709_v54  ;;  %v2580_v63 = vmul.f32 1.442695, %v2522_v53 }
 0x855   : > { %v3713_v62 = vpop.eup %3712  ;;  %2668 = vst [vmem:[%s4858_s1 + $0x60] sm:$0xff] %v3711_v59  ;;  %3730 = vrcp.f32 %v2610_v55  ;;  %v2487_v0 = vpop.f32.mrb[108].mxu0  ;;  %v2582_v2 = vmul.f32 1.442695, %v2523_v57 }
 0x856   : > { %v3715_v1 = vpop.eup %3714  ;;  %2669 = vst [vmem:[%s4858_s1 + $0x68] sm:$0xff] %v3713_v62  ;;  %3732 = vrcp.f32 %v2611_v60  ;;  %v2488_v3 = vadd.f32 %v2487_v0, %v4835_v23  ;;  %v2489_v4 = vpop.f32.mrb[109].mxu0 }
 0x857   : > { %v3717_v5 = vpop.eup %3716  ;;  %2670 = vst [vmem:[%s4858_s1 + $0x70] sm:$0xff] %v3715_v1  ;;  %3734 = vpow2.f32 %v2576_v56  ;;  %v2490_v6 = vadd.f32 %v2489_v4, %v4838_v24  ;;  %v2491_v7 = vpop.f32.mrb[110].mxu0 }
 0x858   : > { %v3719_v8 = vpop.eup %3718  ;;  %2671 = vst [vmem:[%s4858_s1 + $0x78] sm:$0xff] %v3717_v5  ;;  %3736 = vpow2.f32 %v2578_v61  ;;  %v2524_v9 = vsub.f32 0.0, %v2488_v3  ;;  %v2492_v11 = vadd.f32 %v2491_v7, %v4835_v23  ;;  %v2493_v12 = vpop.f32.mrb[111].mxu0 }
 0x859   : > { %v3721_v16 = vpop.eup %3720  ;;  %v2612_v17 = vadd.f32 1.0, %v3719_v8  ;;  %3738 = vpow2.f32 %v2580_v63  ;;  %v2525_v14 = vsub.f32 0.0, %v2490_v6  ;;  %v2494_v18 = vadd.f32 %v2493_v12, %v4838_v24 }
 0x85a   : > { %v3723_v19 = vpop.eup %3722  ;;  %v2613_v20 = vadd.f32 1.0, %v3721_v16  ;;  %3740 = vpow2.f32 %v2582_v2  ;;  %v2526_v21 = vsub.f32 0.0, %v2492_v11  ;;  %v2584_v25 = vmul.f32 1.442695, %v2524_v9 }
 0x85b   : > { %v3725_v22 = vpop.eup %3724  ;;  %3742 = vrcp.f32 %v2612_v17  ;;  %v2614_v50 = vadd.f32 1.0, %v3723_v19  ;;  %v2527_v26 = vsub.f32 0.0, %v2494_v18  ;;  %v2586_v28 = vmul.f32 1.442695, %v2525_v14 }
 0x85c   : > { %3744 = vrcp.f32 %v2613_v20  ;;  %v2615_v23 = vadd.f32 1.0, %v3725_v22  ;;  %v2588_v30 = vmul.f32 1.442695, %v2526_v21 }
 0x85d   : > { %v3727_v29 = vpop.eup %3726  ;;  %3746 = vrcp.f32 %v2614_v50  ;;  %v2590_v31 = vmul.f32 1.442695, %v2527_v26 }
 0x85e   : > { %v3729_v24 = vpop.eup %3728  ;;  %2672 = vst [vmem:[%s4858_s1 + $0x80] sm:$0xff] %v3727_v29  ;;  %3748 = vrcp.f32 %v2615_v23 }
 0x85f   : > { %v3731_v32 = vpop.eup %3730  ;;  %2673 = vst [vmem:[%s4858_s1 + $0x88] sm:$0xff] %v3729_v24  ;;  %3750 = vpow2.f32 %v2584_v25 }
 0x860   : > { %v3733_v33 = vpop.eup %3732  ;;  %2674 = vst [vmem:[%s4858_s1 + $0x90] sm:$0xff] %v3731_v32  ;;  %3752 = vpow2.f32 %v2586_v28 }
 0x861   : > { %v3735_v34 = vpop.eup %3734  ;;  %2675 = vst [vmem:[%s4858_s1 + $0x98] sm:$0xff] %v3733_v33  ;;  %3754 = vpow2.f32 %v2588_v30 }
 0x862   : > { %v3737_v35 = vpop.eup %3736  ;;  %v2616_v58 = vadd.f32 1.0, %v3735_v34  ;;  %3756 = vpow2.f32 %v2590_v31 }
 0x863   : > { %v3739_v13 = vpop.eup %3738  ;;  %v2617_v36 = vadd.f32 1.0, %v3737_v35 }
 0x864   : > { %v3741_v37 = vpop.eup %3740  ;;  %3758 = vrcp.f32 %v2616_v58  ;;  %v2618_v15 = vadd.f32 1.0, %v3739_v13 }
 0x865   : > { %v3743_v38 = vpop.eup %3742  ;;  %3760 = vrcp.f32 %v2617_v36  ;;  %v2619_v39 = vadd.f32 1.0, %v3741_v37 }
 0x866   : > { %v3745_v41 = vpop.eup %3744  ;;  %2676 = vst [vmem:[%s4858_s1 + $0xa0] sm:$0xff] %v3743_v38  ;;  %3762 = vrcp.f32 %v2618_v15 }
 0x867   : > { %v3747_v42 = vpop.eup %3746  ;;  %2677 = vst [vmem:[%s4858_s1 + $0xa8] sm:$0xff] %v3745_v41  ;;  %3764 = vrcp.f32 %v2619_v39 }
 0x868   : > { %v3749_v43 = vpop.eup %3748  ;;  %2678 = vst [vmem:[%s4858_s1 + $0xb0] sm:$0xff] %v3747_v42 }
 0x869   : > { %v3751_v44 = vpop.eup %3750  ;;  %2679 = vst [vmem:[%s4858_s1 + $0xb8] sm:$0xff] %v3749_v43 }
 0x86a   : > { %v3753_v47 = vpop.eup %3752  ;;  %v2620_v45 = vadd.f32 1.0, %v3751_v44 }
 0x86b   : > { %v3755_v46 = vpop.eup %3754  ;;  %v2621_v48 = vadd.f32 1.0, %v3753_v47 }
 0x86c   : > { %v3757_v27 = vpop.eup %3756  ;;  %3766 = vrcp.f32 %v2620_v45  ;;  %v2622_v10 = vadd.f32 1.0, %v3755_v46 }
 0x86d   : > { %3768 = vrcp.f32 %v2621_v48  ;;  %v2623_v49 = vadd.f32 1.0, %v3757_v27 }
 0x86e   : > { %v3759_v51 = vpop.eup %3758  ;;  %3770 = vrcp.f32 %v2622_v10 }
 0x86f   : > { %v3761_v40 = vpop.eup %3760  ;;  %2680 = vst [vmem:[%s4858_s1 + $0xc0] sm:$0xff] %v3759_v51  ;;  %3772 = vrcp.f32 %v2623_v49 }
 0x870   : > { %v3763_v52 = vpop.eup %3762  ;;  %2681 = vst [vmem:[%s4858_s1 + $0xc8] sm:$0xff] %v3761_v40 }
 0x871   : > { %v3765_v53 = vpop.eup %3764  ;;  %2682 = vst [vmem:[%s4858_s1 + $0xd0] sm:$0xff] %v3763_v52 }
 0x872   : > { %2683 = vst [vmem:[%s4858_s1 + $0xd8] sm:$0xff] %v3765_v53 }
 0x876   : > { %v3767_v54 = vpop.eup %3766 }
 0x877   : > { %v3769_v55 = vpop.eup %3768  ;;  %2684 = vst [vmem:[%s4858_s1 + $0xe0] sm:$0xff] %v3767_v54 }
 0x878   : > { %v3771_v56 = vpop.eup %3770  ;;  %2685 = vst [vmem:[%s4858_s1 + $0xe8] sm:$0xff] %v3769_v55 }
 0x879   : > { %v3773_v57 = vpop.eup %3772  ;;  %2686 = vst [vmem:[%s4858_s1 + $0xf0] sm:$0xff] %v3771_v56 }
 0x87a   : > { %2687 = vst [vmem:[%s4858_s1 + $0xf8] sm:$0xff] %v3773_v57 }
 0x87b   : > { %4069 = shalt.err (!%p4066_p0)
}
 0x87c   : > { %s4070_s1 = scalar_lea.hbm %s4910_s25, 4096  ;;  %s4074_s27 = scalar_lea.hbm %s5015_s21, 8192 }
 0x87d   : > { %p4071_p2 = scmp.ne.s32.totalorder %s4910_s25, %s4070_s1  ;;  %p4075_p10 = scmp.lt.u32.totalorder %s4910_s25, %s5015_s21 }
 0x87e   : > { %p4076_p11 = scmp.lt.u32.totalorder %s4074_s27, %s4070_s1  ;;  %p4078_p13 = scmp.lt.u32.totalorder %s4070_s1, %s4910_s25 }
 0x87f   : > { %p4072_p6 = pnand %p4071_p2, %p5013_p1 }
 0x880   : > { %p4077_p12 = por %p4076_p11, %p4075_p10 }
 0x881   : > { %p4073_p5 = pneg %p4072_p6 }
 0x882   : > { %p4079_p8 = por %p4078_p13, %p4077_p12 }
 0x884   : > { %p4080_p7 = pnand %p4079_p8, %p4073_p5 }
 0x886   : > { %4083 = shalt.err (!%p4080_p7)
}
 0x887   : > { %s4164_s28 = smov 256   ;;  %s4165_s30 = smov 16  }
 0x888   : > { %3402 = dma.vmem_to_hbm [thread:$0]  (%p5013_p1), %s4912_s9, 4096, %s4910_s25, %s2694_s23, %s4164_s28, %s4164_s28, %s4165_s30  }
 0x889 PF: > { %s2739_s24 = sand.u32 1, %s4130_s17   ;;  %p5016_p9 = scmp.ne.s32.totalorder %s5000_s26, 0 }
 0x88a   : > { %p5017_p4 = scmp.ge.s32.totalorder %s4142_s20, 2  ;;  %s2740_s1 = scalar_lea.sflag [#allocation4], %s2739_s24 }
 0x88c   : > { %p3435_p3 = pnand %p5017_p4, %p5016_p9 }
 0x88e   : > { %4121 = dma.done.wait (!%p3435_p3), %s2740_s1, 2048  }
 0x88f   : > { %4123 = vsyncadd (!%p3435_p3), %s2740_s1, 4294965248  ;;  %s2749_s29 = scalar_lea.sflag [#allocation19], %s2739_s24 }
 0x890   : > { %4125 = dma.done.wait (!%p3435_p3), %s2749_s29, 4096  }
 0x891   : > { %4127 = vsyncadd (!%p3435_p3), %s2749_s29, 4294963200  ;;  %p32_p1 = scmp.ge.s32.totalorder %s4458_s16, 4   ;;  %s5018_s17 = smov %s4134_s18 }
 0x892   : > { %s5019_s18 = smov %s4138_s19  ;;  %s5020_s19 = smov %s4469_s13 }
 0x893   : > { %s5021_s20 = smov %s4458_s16  ;;  %34 = sbr.rel (!%p32_p1) target bundleno = 16 (0x10), region = 154 }
 0x89a   :  { %2754 = vsyncpa [#allocation3], 1 }
 0x89b   :  { %2756 = vsyncpa [#allocation3 + $0x1], 1 }
 0x89c   :  { %2757 = vsyncpa [#allocation6], 1 }
 0x89d   :  { %2758 = vsyncpa [#allocation9], 1 }
 0x89e   :  { %2759 = vsyncpa [#allocation12], 1 }
 0x89f   :  { %2760 = vsyncpa [#allocation15], 1 }
 0x8a0   :  { %2761 = vsyncpa [#allocation4], 1 }
 0x8a1   :  { %2763 = vsyncpa [#allocation4 + $0x1], 1 }
 0x8a2   :  { %2764 = vsyncpa [#allocation19], 1 }
 0x8a3   :  { %2766 = vsyncpa [#allocation19 + $0x1], 1 }

</bundles_post_ra>
